<compile_context>
chip_gen: v7x
topology: tpu7x:2x2x1
jax: 0.10.0
libtpu: 0.0.40
codegen_flags: <defaults>
</compile_context>

<pallas_src>
import functools

import jax
import jax.numpy as jnp
import numpy as np
from jax import lax
from jax.experimental import pallas as pl
from jax.experimental.pallas import tpu as pltpu


def _round_up(x: int, m: int) -> int:
    return ((x + m - 1) // m) * m


def _rbf_cutoff_kernel(d_ref, expand_ref, centers_ref, out_ref, *,
                       inv_cutoff, width):
    # d_ref:       (R, g)    g = 128 // n_rbf consecutive distances per output row
    # expand_ref:  (g, 128)  one-hot lane-replication matrix (trace-time constant)
    # centers_ref: (1, 128)  gaussian centers tiled g times (lane l -> center[l % K])
    # out_ref:     (R, 128)  lane-dense output (lane l of row r -> distance r*g + l//K)
    d = d_ref[...].astype(jnp.float32)                         # (R, g)

    # --- narrow per-distance work (once per distance, not once per basis) ---
    dr = d * inv_cutoff
    d3 = dr * dr * dr
    # phi = 1 - 6 r^5 + 15 r^4 - 10 r^3 in Horner form.
    phi = jnp.where(dr < 1.0, 1.0 + d3 * (-10.0 + dr * (15.0 - 6.0 * dr)), 0.0)
    e = jnp.exp(-d)                                            # (R, g)

    # --- lane expansion: (R, g) @ (g, 128) one-hot -> (R, 128) on the MXU ---
    # HIGHEST precision: the 3-pass bf16 decomposition reassembles f32 exactly,
    # so the copy through the one-hot is bit-exact.
    expand = expand_ref[...]
    phi_w = jnp.dot(phi, expand, precision=lax.Precision.HIGHEST,
                    preferred_element_type=jnp.float32)        # (R, 128)
    e_w = jnp.dot(e, expand, precision=lax.Precision.HIGHEST,
                  preferred_element_type=jnp.float32)          # (R, 128)

    # --- per-(distance, basis) work: one sub, one mul-square, one EUP exp ---
    diff = e_w - centers_ref[...]
    out_ref[...] = (phi_w * jnp.exp(-width * (diff * diff))).astype(out_ref.dtype)


def rbf_cutoff_params(n_rbf_basis: int, cutoff: float):
    """Deterministic parameter init matching the PyTorch module __init__."""
    centers = np.linspace(1.0, np.exp(-cutoff), n_rbf_basis).astype(np.float32)
    width = np.float32((0.5 / ((1.0 - np.exp(-cutoff)) / n_rbf_basis)) ** 2)
    return jnp.asarray(centers), jnp.asarray(width)


def rbf_cutoff(D, centers, width, cutoff: float, *, block_m: int = 32768,
               out_dtype=None):
    """D: [B, A, N] -> [B, A, N, K] (K = centers.shape[0])."""
    B, A, N = D.shape
    K = int(centers.shape[0])
    if 128 % K != 0:
        # TODO(synk): support n_rbf_basis that does not divide 128 (needs a padded-K layout).
        raise NotImplementedError("n_rbf_basis must divide 128 for the lane-dense layout")
    g = 128 // K
    M = B * A * N
    out_dtype = D.dtype if out_dtype is None else out_dtype

    # Padding is decoupled from block_m: pad only to an 8*g row-alignment
    # multiple (rows stay sublane-aligned); <= 8*g - 1 wasted distances.
    pad_align = 8 * g
    M_pad = _round_up(M, pad_align)
    n_rows = M_pad // g

    # Tile sizing: multiples of 1024 distances keep (rows, g) blocks sublane-
    # aligned for every legal K. Clamp so large inputs keep >= 4 grid steps
    # (2 per v7x TensorCore) and small inputs aren't over-tiled; cap the block
    # so the double-buffered footprint stays well under the scoped VMEM limit.
    block_m = max(1024, min(_round_up(int(block_m), 1024),
                            _round_up(pl.cdiv(M, 4), 1024),
                            131072))
    block_rows = min(block_m // g, n_rows)      # never bigger than the array
    num_blocks = pl.cdiv(n_rows, block_rows)    # ragged last block is masked

    d_flat = D.reshape(M)                       # native dtype; cast in-kernel
    if M_pad != M:
        d_flat = jnp.pad(d_flat, (0, M_pad - M))   # zero tail, sliced off below
    d_rows = d_flat.reshape(n_rows, g)

    # Trace-time constants: one-hot lane-replication matrix and tiled centers.
    expand = jnp.asarray(np.repeat(np.eye(g, dtype=np.float32), K, axis=1))  # (g, 128)
    centers_tiled = jnp.tile(jnp.asarray(centers, jnp.float32).reshape(K),
                             (g,)).reshape(1, 128)

    kernel = functools.partial(
        _rbf_cutoff_kernel,
        inv_cutoff=1.0 / float(cutoff),
        width=float(width),            # width / cutoff baked as compile-time scalars
    )

    out = pl.pallas_call(
        kernel,
        out_shape=jax.ShapeDtypeStruct((n_rows, 128), out_dtype),
        grid_spec=pltpu.PrefetchScalarGridSpec(
            num_scalar_prefetch=0,
            grid=(num_blocks,),
            in_specs=[
                pl.BlockSpec((block_rows, g), lambda i: (i, 0)),
                pl.BlockSpec((g, 128), lambda i: (0, 0)),   # resident one-hot
                pl.BlockSpec((1, 128), lambda i: (0, 0)),   # resident centers
            ],
            out_specs=pl.BlockSpec((block_rows, 128), lambda i: (i, 0)),
        ),
        compiler_params=pltpu.CompilerParams(
            dimension_semantics=("parallel",),
            vmem_limit_bytes=32 * 1024 * 1024,   # keep big tiles viable on v5e
        ),
    )(d_rows, expand, centers_tiled)

    out = out.reshape(M_pad, K)
    if M_pad != M:
        # Padding is at most 8*g - 1 rows; the slice should fuse into the
        # consumer's first read of the result.
        out = out[:M]
    return out.reshape(B, A, N, K)


def rbf_cutoff_ref(D, centers, width, cutoff: float):
    """Pure-JAX reference matching the PyTorch forward."""
    d = D[:, :, :, None].astype(jnp.float32)
    dr = d / cutoff
    d3 = dr ** 3
    d4 = d3 * dr
    d5 = d4 * dr
    phi = jnp.where(dr < 1.0, 1.0 - 6.0 * d5 + 15.0 * d4 - 10.0 * d3,
                    jnp.zeros_like(dr))
    return phi * jnp.exp(-width * (jnp.exp(-d) - centers) ** 2)


if __name__ == "__main__":
    n_rbf_basis = 16
    cutoff = 5.0
    centers, width = rbf_cutoff_params(n_rbf_basis, cutoff)

    key = jax.random.PRNGKey(0)
    k1, k2 = jax.random.split(key)

    # Main check: M = 2048 -> block clamps to 1024 distances, grid of 2 steps.
    B, A, N = 2, 32, 32
    D = jax.random.uniform(k1, (B, A, N), jnp.float32, 0.0, 1.5 * cutoff)
    out = jax.block_until_ready(rbf_cutoff(D, centers, width, cutoff))
    ref = rbf_cutoff_ref(D, centers, width, cutoff)
    np.testing.assert_allclose(np.asarray(out), np.asarray(ref),
                               rtol=2e-5, atol=5e-6)

    # Ragged-shape check: exercises the small-pad + tail-slice path (M = 126).
    B2, A2, N2 = 2, 7, 9
    D2 = jax.random.uniform(k2, (B2, A2, N2), jnp.float32, 0.0, 1.5 * cutoff)
    out2 = jax.block_until_ready(rbf_cutoff(D2, centers, width, cutoff))
    ref2 = rbf_cutoff_ref(D2, centers, width, cutoff)
    np.testing.assert_allclose(np.asarray(out2), np.asarray(ref2),
                               rtol=2e-5, atol=5e-6)

    print("KERNEL_OK")
</pallas_src>

<mosaic_0001>
module attributes {stable_mosaic.version = 11 : i64} {
  func.func @_rbf_cutoff_kernel(%arg0: i32, %arg1: memref<128x8xf32, #tpu.memory_space<vmem>>, %arg2: memref<8x128xf32, #tpu.memory_space<vmem>>, %arg3: memref<1x128xf32, #tpu.memory_space<vmem>>, %arg4: memref<128x128xf32, #tpu.memory_space<vmem>>) attributes {dimension_semantics = [#tpu.dimension_semantics<parallel>], iteration_bounds = array<i64: 2>, scalar_prefetch = 0 : i64, scratch_operands = 0 : i64, tpu.core_type = #tpu.core_type<tc>, window_params = [{transform_indices = @transform_0, window_bounds = array<i64: 128, 8>}, {pipeline_mode = #tpu.pipeline_mode<synchronous>, transform_indices = @transform_1, window_bounds = array<i64: 8, 128>}, {pipeline_mode = #tpu.pipeline_mode<synchronous>, transform_indices = @transform_2, window_bounds = array<i64: 1, 128>}, {transform_indices = @transform_3, window_bounds = array<i64: 128, 128>}]} {
    %c0 = arith.constant 0 : index
    %c0_0 = arith.constant 0 : index
    %0 = vector.load %arg1[%c0, %c0_0] : memref<128x8xf32, #tpu.memory_space<vmem>>, vector<128x8xf32>
    %cst = arith.constant 2.000000e-01 : f32
    %1 = vector.broadcast %cst : f32 to vector<128x8xf32>
    %2 = arith.mulf %0, %1 : vector<128x8xf32>
    %3 = arith.mulf %2, %2 : vector<128x8xf32>
    %4 = arith.mulf %3, %2 : vector<128x8xf32>
    %cst_1 = arith.constant 1.000000e+00 : f32
    %5 = vector.broadcast %cst_1 : f32 to vector<128x8xf32>
    %6 = arith.cmpf olt, %2, %5 : vector<128x8xf32>
    %cst_2 = arith.constant 6.000000e+00 : f32
    %7 = vector.broadcast %cst_2 : f32 to vector<128x8xf32>
    %8 = arith.mulf %7, %2 : vector<128x8xf32>
    %cst_3 = arith.constant 1.500000e+01 : f32
    %9 = vector.broadcast %cst_3 : f32 to vector<128x8xf32>
    %10 = arith.subf %9, %8 : vector<128x8xf32>
    %11 = arith.mulf %2, %10 : vector<128x8xf32>
    %cst_4 = arith.constant -1.000000e+01 : f32
    %12 = vector.broadcast %cst_4 : f32 to vector<128x8xf32>
    %13 = arith.addf %12, %11 : vector<128x8xf32>
    %14 = arith.mulf %4, %13 : vector<128x8xf32>
    %cst_5 = arith.constant 1.000000e+00 : f32
    %15 = vector.broadcast %cst_5 : f32 to vector<128x8xf32>
    %16 = arith.addf %15, %14 : vector<128x8xf32>
    %cst_6 = arith.constant 0.000000e+00 : f32
    %17 = vector.broadcast %cst_6 : f32 to vector<128x8xf32>
    %18 = arith.select %6, %16, %17 : vector<128x8xi1>, vector<128x8xf32>
    %cst_7 = arith.constant 0.000000e+00 : f32
    %19 = vector.broadcast %cst_7 : f32 to vector<128x8xf32>
    %20 = arith.subf %19, %0 : vector<128x8xf32>
    %21 = math.exp %20 : vector<128x8xf32>
    %c0_8 = arith.constant 0 : index
    %c0_9 = arith.constant 0 : index
    %22 = vector.load %arg2[%c0_8, %c0_9] : memref<8x128xf32, #tpu.memory_space<vmem>>, vector<8x128xf32>
    %cst_10 = arith.constant dense<0.000000e+00> : vector<128x128xf32>
    %23 = tpu.matmul %18, %22, %cst_10 {dimension_numbers = #tpu.dot_dimension_numbers<[1], [0], [0], [1], [0, 0, 1, 1], [], []>, precision = #tpu.contract_precision<fp32>} : vector<128x8xf32>, vector<8x128xf32>, vector<128x128xf32> -> vector<128x128xf32>
    %cst_11 = arith.constant dense<0.000000e+00> : vector<128x128xf32>
    %24 = tpu.matmul %21, %22, %cst_11 {dimension_numbers = #tpu.dot_dimension_numbers<[1], [0], [0], [1], [0, 0, 1, 1], [], []>, precision = #tpu.contract_precision<fp32>} : vector<128x8xf32>, vector<8x128xf32>, vector<128x128xf32> -> vector<128x128xf32>
    %c0_12 = arith.constant 0 : index
    %c0_13 = arith.constant 0 : index
    %25 = vector.load %arg3[%c0_12, %c0_13] : memref<1x128xf32, #tpu.memory_space<vmem>>, vector<1x128xf32>
    %26 = vector.broadcast %25 : vector<1x128xf32> to vector<128x128xf32>
    %27 = arith.subf %24, %26 : vector<128x128xf32>
    %28 = arith.mulf %27, %27 : vector<128x128xf32>
    %cst_14 = arith.constant -64.871254 : f32
    %29 = vector.broadcast %cst_14 : f32 to vector<128x128xf32>
    %30 = arith.mulf %29, %28 : vector<128x128xf32>
    %31 = math.exp %30 : vector<128x128xf32>
    %32 = arith.mulf %23, %31 : vector<128x128xf32>
    %c0_15 = arith.constant 0 : index
    %c0_16 = arith.constant 0 : index
    %33 = vector.load %arg4[%c0_15, %c0_16] : memref<128x128xf32, #tpu.memory_space<vmem>>, vector<128x128xf32>
    tpu.vector_store %arg4[%c0_15, %c0_16], %32 {strides = array<i32>} : memref<128x128xf32, #tpu.memory_space<vmem>>, vector<128x128xf32>,
    return
  }
  func.func @transform_0(%arg0: i32) -> (i32, i32) {
    %c0_i32 = arith.constant 0 : i32
    %c0_i32_0 = arith.constant 0 : i32
    return %arg0, %c0_i32 : i32, i32
  }
  func.func @transform_1(%arg0: i32) -> (i32, i32) {
    %c0_i32 = arith.constant 0 : i32
    %c0_i32_0 = arith.constant 0 : i32
    %c0_i32_1 = arith.constant 0 : i32
    return %c0_i32, %c0_i32_0 : i32, i32
  }
  func.func @transform_2(%arg0: i32) -> (i32, i32) {
    %c0_i32 = arith.constant 0 : i32
    %c0_i32_0 = arith.constant 0 : i32
    %c0_i32_1 = arith.constant 0 : i32
    return %c0_i32, %c0_i32_0 : i32, i32
  }
  func.func @transform_3(%arg0: i32) -> (i32, i32) {
    %c0_i32 = arith.constant 0 : i32
    %c0_i32_0 = arith.constant 0 : i32
    return %arg0, %c0_i32 : i32, i32
  }
}

</mosaic_0001>

<bundles_post_ra>
// kernel: tpu_custom_call.1
= control target key start
LH: loop header
LB: loop body
LE: loop exit
PB: predicated region body
PF: predicated region fallthrough
CT: control target
= control target key end

     0   :  { %8 = vsyncpa [#allocation3], 0  ;;  %s4674_s0 = inlined_call_operand.vmem [shape: f32[256,8], index: 0, kind: input, shape index: {}]   ;;  %s4675_s1 = inlined_call_operand.vmem [shape: f32[8,128], index: 1, kind: input, shape index: {}]   ;;  %s4676_s2 = inlined_call_operand.vmem [shape: f32[1,128], index: 2, kind: input, shape index: {}]   ;;  %s4677_s3 = inlined_call_operand.hbm [shape: f32[256,128], index: 3, kind: output, shape index: {}]  }
   0x1   :  { %10 = vsyncpa [#allocation3 + $0x1], 0  ;;  %s3769_s12 = smov 0   ;;  %s3771_s13 = smov 0  }
   0x2   :  { %s3773_s14 = smov 0   ;;  %s3775_s15 = smov 0  }
   0x3 LB: > { %s3790_s16 = sadd.s32 4294967295, %s3744_s15   ;;  %s2887_s17 = sadd.s32 4294967294, %s3744_s15   ;;  %s3744_s15 = sphi %s3775_s15, %s4835_s15   ;;  %s3740_s14 = sphi %s3773_s14, %s4834_s14   ;;  %s3736_s13 = sphi %s3771_s13, %s4833_s13   ;;  %s3732_s12 = sphi %s3769_s12, %s4832_s12  }
   0x4   : > { %s3794_s18 = sadd.s32 1, %s3744_s15   ;;  %s91_s19 = sadd.s32 1, %s3740_s14 }
   0x5   : > { %s88_s20 = ssub.s32 %s3744_s15, %s3794_s18  ;;  %p101_p0 = scmp.ne.s32.totalorder %s3740_s14, %s3736_s13 }
   0x6   : > { %p89_p1 = scmp.eq.s32.totalorder %s88_s20, 0  ;;  %p102_p2 = scmp.eq.s32.totalorder %s3790_s16, 1 }
   0x7   : > { %p107_p3 = scmp.ne.s32.totalorder %s3736_s13, %s3732_s12  ;;  %p108_p4 = scmp.eq.s32.totalorder %s2887_s17, 1 }
   0x8   : > { %s3805_s21 = scalar_select %p89_p1, %s3740_s14, %s91_s19  }
   0x9   : > { %p3807_p5 = por %p102_p2, %p101_p0  ;;  %p3811_p6 = por %p108_p4, %p107_p3 }
   0xa   : > { %p2890_p7 = scmp.ge.s32.totalorder %s3744_s15, 1  ;;  %p141_p8 = scmp.lt.s32.totalorder %s3744_s15, 3 }
   0xc   : > { %p142_p9 = pnand %p2890_p7, %p141_p8 }
   0xe   : > { %145 = sbr.rel (%p142_p9) target bundleno = 553 (0x229), region = 32 }
  0x15   : > { %v412_v0 = vld [vmem:[%s4675_s1] sm:$0xff]  ;;  %s2892_s26 = sshll.u32 %s3790_s16, 4  ;;  %vm413_vm1 = vcmask 64512   ;;  %s162_s6 = sand.u32 1, %s3736_s13  }
  0x16   : > { %v3821_v1 = vand.u32 4294901760, %v412_v0  ;;  %p166_p10 = scmp.lt.s32.totalorder %s2892_s26, 31  ;;  %s2891_s7 = sshll.u32 %s162_s6, 7 }
  0x17   : > { %s4583_s8 = scalar_lea.vmem [#allocation2], %s2891_s7  ;;  %s2900_s9 = sshll.u32 %s3790_s16, 11 }
  0x18   : > { %3261 = vmatprep.subr.mxu1 %v3821_v1  ;;  %3105 = vmatprep.subr.mxu0 %v3821_v1  ;;  %s4837_s26 = smov (!%p166_p10, %s2892_s26), 31  ;;  %v3826_v2 = vsub.f32 %v412_v0, %v3821_v1  ;;  %s2825_s10 = sshll.u32 %s4583_s8, 4  ;;  %s4627_s10 = int_to_ptr.vmem [resolvable:$true] %s2825_s10 }
  0x19   : > { %3262 = vmatpush3.msra.mxu1 %v3821_v1  ;;  %3106 = vmatpush3.msra.mxu0 %v3821_v1  ;;  %s2893_s27 = sshll.u32 %s4837_s26, 3  ;;  %s4625_s19 = scalar_lea.hbm %s4677_s3, %s2900_s9 }
  0x1a   : > { %v3831_v3 = vand.u32 4294901760, %v3826_v2  ;;  %s3836_s30 = scalar_lea.vmem %s4674_s0, %s2893_s27  ;;  %s4633_s16 = scalar_lea.sflag [#allocation3], %s162_s6 }
  0x1b   : > { %v172_v4 = vld [vmem:[%s3836_s30] sm:$0xff]  ;;  %v173_v6 = vld [vmem:[%s3836_s30 + $0x8] sm:$0xff]  ;;  %v174_v7 = vld [vmem:[%s3836_s30 + $0x10] sm:$0xff]  ;;  %s3682_s20 = scalar_lea.vmem %s4627_s10, 2048  ;;  %s3746_s24 = smov [#allocation2]  }
  0x1c   : > { %v692_v5 = vsub.f32 %v3826_v2, %v3831_v3  ;;  %v188_v8 = vmul.f32 0.2, %v172_v4  ;;  %v364_v9 = vsub.f32 0.0, %v172_v4  ;;  %v3843_v10 = vmul.f32 0.2, %v173_v6  ;;  %v175_v23 = vld [vmem:[%s3836_s30 + $0x18] sm:$0xff]  ;;  %p3683_p11 = scmp.ne.s32.totalorder %s4627_s10, %s3682_s20 }
  0x1d   : > { %v365_v11 = vsub.f32 0.0, %v173_v6  ;;  %v3847_v13 = vmul.f32 0.2, %v174_v7  ;;  %v366_v17 = vsub.f32 0.0, %v174_v7  ;;  %v176_v26 = vld [vmem:[%s3836_s30 + $0x20] sm:$0xff]  ;;  %v367_v34 = vsub.f32 0.0, %v175_v23 }
  0x1e   : > { %v3845_v12 = vand.u32 4294901760, %v692_v5  ;;  %v204_v14 = vmul.f32 %v188_v8, %v188_v8  ;;  %v252_v15 = vmul.f32 6.0, %v188_v8  ;;  %v380_v16 = vmul.f32 1.442695, %v364_v9  ;;  %v3876_v49 = vld [vmem:[%s3836_s30 + $0x28] sm:$0xff]  ;;  %p3684_p12 = pnand %p3683_p11, %p3807_p5  ;;  %s3686_s25 = sshll.u32 %s3746_s24, 4  ;;  %s3687_s25 = int_to_ptr.vmem [resolvable:$false] %s3686_s25 }
  0x1f   : > { %v205_v18 = vmul.f32 %v3843_v10, %v3843_v10  ;;  %v253_v19 = vmul.f32 6.0, %v3843_v10  ;;  %v382_v20 = vmul.f32 1.442695, %v365_v11  ;;  %vm236_vm0 = vcmp.lt.f32.partialorder %v188_v8, 1.0  ;;  %s3688_s26 = scalar_lea.vmem %s3687_s25, 4096  ;;  %p3689_p0 = scmp.lt.s32.totalorder %s4627_s10, %s3687_s25 }
  0x20   : > { %3287 = vmatprep.subr.mxu1 %v3845_v12  ;;  %3131 = vmatprep.subr.mxu0 %v3845_v12  ;;  %v268_v21 = vsub.f32 15.0, %v252_v15  ;;  %3618 = vpow2.f32 %v380_v16  ;;  %v206_v22 = vmul.f32 %v3847_v13, %v3847_v13  ;;  %v220_v24 = vmul.f32 %v204_v14, %v188_v8  ;;  %p3685_p13 = pneg %p3684_p12  ;;  %p3690_p1 = scmp.lt.s32.totalorder %s3688_s26, %s3682_s20 }
  0x21   : > { %vm237_vm2 = vcmp.lt.f32.partialorder %v3843_v10, 1.0  ;;  %v269_v25 = vsub.f32 15.0, %v253_v19  ;;  %3620 = vpow2.f32 %v382_v20  ;;  %v221_v28 = vmul.f32 %v205_v18, %v3843_v10 }
  0x22   : > { %v284_v27 = vmul.f32 %v268_v21, %v188_v8  ;;  %v254_v29 = vmul.f32 6.0, %v3847_v13  ;;  %v384_v30 = vmul.f32 1.442695, %v366_v17  ;;  %v222_v32 = vmul.f32 %v206_v22, %v3847_v13  ;;  %p3691_p2 = por %p3690_p1, %p3689_p0 }
  0x23   : > { %v285_v31 = vmul.f32 %v269_v25, %v3843_v10  ;;  %v3863_v33 = vmul.f32 0.2, %v175_v23  ;;  %v3865_v37 = vmul.f32 0.2, %v176_v26  ;;  %v368_v41 = vsub.f32 0.0, %v176_v26 }
  0x24   : > { %v300_v35 = vadd.f32 -10.0, %v284_v27  ;;  %v270_v36 = vsub.f32 15.0, %v254_v29  ;;  %3622 = vpow2.f32 %v384_v30  ;;  %v386_v44 = vmul.f32 1.442695, %v367_v34  ;;  %p3692_p3 = pnand %p3691_p2, %p3685_p13 }
  0x25   : > { %v301_v38 = vadd.f32 -10.0, %v285_v31  ;;  %v207_v39 = vmul.f32 %v3863_v33, %v3863_v33  ;;  %v255_v40 = vmul.f32 6.0, %v3863_v33  ;;  %v208_v45 = vmul.f32 %v3865_v37, %v3865_v37 }
  0x26   : > { %v316_v42 = vmul.f32 %v300_v35, %v220_v24  ;;  %v286_v43 = vmul.f32 %v270_v36, %v3847_v13  ;;  %vm238_vm3 = vcmp.lt.f32.partialorder %v3847_v13, 1.0  ;;  %vm239_vm4 = vcmp.lt.f32.partialorder %v3863_v33, 1.0 }
  0x27   : > { %v317_v46 = vmul.f32 %v301_v38, %v221_v28  ;;  %v223_v47 = vmul.f32 %v207_v39, %v3863_v33  ;;  %v271_v48 = vsub.f32 15.0, %v255_v40  ;;  %3624 = vpow2.f32 %v386_v44 }
  0x28   : > { %v332_v50 = vadd.f32 1.0, %v316_v42  ;;  %v302_v51 = vadd.f32 -10.0, %v286_v43  ;;  %v3880_v52 = vmul.f32 %v208_v45, %v3865_v37  ;;  %v256_v55 = vmul.f32 6.0, %v3865_v37 }
  0x29   : > { %v333_v53 = vadd.f32 1.0, %v317_v46  ;;  %v287_v54 = vmul.f32 %v271_v48, %v3863_v33  ;;  %v388_v56 = vmul.f32 1.442695, %v368_v41  ;;  %v3886_v60 = vmul.f32 0.2, %v3876_v49 }
  0x2a   : > { %v3619_v57 = vpop.eup %3618  ;;  %v348_v58 = vsel %vm236_vm0, %v332_v50, 0.0  ;;  %v318_v59 = vmul.f32 %v302_v51, %v222_v32  ;;  %v369_v61 = vsub.f32 0.0, %v3876_v49  ;;  %v272_v19 = vsub.f32 15.0, %v256_v55 }
  0x2b   : > { %v3621_v62 = vpop.eup %3620  ;;  %v415_v63 = vsel %vm413_vm1, %v348_v58, 0  ;;  %v1554_v0 = vsel %vm413_vm1, %v3619_v57, 0  ;;  %v349_v4 = vsel %vm237_vm2, %v333_v53, 0.0  ;;  %v303_v5 = vadd.f32 -10.0, %v287_v54 }
  0x2c   : > { %v3893_v6 = vand.u32 4294901760, %v415_v63  ;;  %v3895_v7 = vand.u32 4294901760, %v1554_v0  ;;  %v418_v8 = vsel %vm413_vm1, %v349_v4, 0  ;;  %v1557_v9 = vsel %vm413_vm1, %v3621_v62, 0  ;;  %v178_v4 = vld [vmem:[%s3836_s30 + $0x30] sm:$0xff] }
  0x2d   : > { %v3899_v11 = vand.u32 4294901760, %v418_v8  ;;  %v3901_v14 = vand.u32 4294901760, %v1557_v9  ;;  %v334_v15 = vadd.f32 1.0, %v318_v59  ;;  %v319_v16 = vmul.f32 %v303_v5, %v223_v47 }
  0x2e   : > { %v3623_v17 = vpop.eup %3622  ;;  %v3904_v18 = vsub.f32 %v415_v63, %v3893_v6  ;;  %v3907_v10 = vsub.f32 %v1554_v0, %v3895_v7  ;;  %3626 = vpow2.f32 %v388_v56  ;;  %v288_v36 = vmul.f32 %v272_v19, %v3865_v37 }
  0x2f   : > { %v3910_v20 = vsub.f32 %v418_v8, %v3899_v11  ;;  %v3913_v21 = vsub.f32 %v1557_v9, %v3901_v14  ;;  %v350_v22 = vsel %vm238_vm3, %v334_v15, 0.0  ;;  %v1560_v23 = vsel %vm413_vm1, %v3623_v17, 0 }
  0x30   : > { %v4695_v24 = vand.u32 4294901760, %v3904_v18  ;;  %v4694_v25 = vand.u32 4294901760, %v3907_v10  ;;  %v421_v26 = vsel %vm413_vm1, %v350_v22, 0  ;;  %v3921_v27 = vand.u32 4294901760, %v1560_v23 }
  0x31   : > { %v4691_v28 = vand.u32 4294901760, %v3910_v20  ;;  %v4689_v29 = vand.u32 4294901760, %v3913_v21  ;;  %v3925_v30 = vand.u32 4294901760, %v421_v26  ;;  %v335_v31 = vadd.f32 1.0, %v319_v16  ;;  %v3625_v32 = vpop.eup %3624 }
  0x32   : > { %v531_v13 = vsub.f32 %v3904_v18, %v4695_v24  ;;  %v1670_v34 = vsub.f32 %v3907_v10, %v4694_v25  ;;  %v3934_v35 = vsub.f32 %v1560_v23, %v3921_v27  ;;  %v1563_v33 = vsel %vm413_vm1, %v3625_v32, 0 }
  0x33   : > { %v541_v38 = vsub.f32 %v3910_v20, %v4691_v28  ;;  %v1680_v39 = vsub.f32 %v3913_v21, %v4689_v29  ;;  %v3944_v40 = vsub.f32 %v421_v26, %v3925_v30  ;;  %v351_v41 = vsel %vm239_vm4, %v335_v31, 0.0 }
  0x34   : > { %v532_v42 = vand.u32 4294901760, %v531_v13  ;;  %v1671_v43 = vand.u32 4294901760, %v1670_v34  ;;  %v4688_v44 = vand.u32 4294901760, %v3934_v35  ;;  %v424_v45 = vsel %vm413_vm1, %v351_v41, 0  ;;  %v180_v41 = vld [vmem:[%s3836_s30 + $0x40] sm:$0xff] }
  0x35   : > { %v542_v46 = vand.u32 4294901760, %v541_v38  ;;  %v1681_v47 = vand.u32 4294901760, %v1680_v39  ;;  %v4690_v48 = vand.u32 4294901760, %v3944_v40  ;;  %v3951_v50 = vand.u32 4294901760, %v424_v45 }
  0x36   : > { %3107 = vmatprep.mubr.f32.mxu0 %v532_v42  ;;  %3263 = vmatprep.mubr.f32.mxu1 %v1671_v43  ;;  %v1690_v51 = vsub.f32 %v3934_v35, %v4688_v44  ;;  %v304_v53 = vadd.f32 -10.0, %v288_v36  ;;  %v209_v54 = vmul.f32 %v3886_v60, %v3886_v60  ;;  %v3965_v57 = vand.u32 4294901760, %v1563_v33  ;;  %v179_v36 = vld [vmem:[%s3836_s30 + $0x38] sm:$0xff] }
  0x37   : > { %3108 = vmatmul.mubr.f32.vlgmr.msra.gmra.mrb[0].mxu0 %v542_v46  ;;  %3264 = vmatmul.mubr.f32.vlgmr.msra.gmra.mrb[0].mxu1 %v1681_v47  ;;  %v551_v55 = vsub.f32 %v3944_v40, %v4690_v48  ;;  %v3963_v56 = vsub.f32 %v424_v45, %v3951_v50  ;;  %vm240_vm5 = vcmp.lt.f32.partialorder %v3865_v37, 1.0  ;;  %v257_v0 = vmul.f32 6.0, %v3886_v60 }
  0x38   : > { %v3627_v58 = vpop.eup %3626  ;;  %3288 = vmatpush3.msra.mxu1 %v3845_v12  ;;  %v1691_v59 = vand.u32 4294901760, %v1690_v51  ;;  %v320_v62 = vmul.f32 %v304_v53, %v3880_v52  ;;  %v225_v63 = vmul.f32 %v209_v54, %v3886_v60  ;;  %3132 = vmatpush3.msra.mxu0 %v3845_v12  ;;  %v3976_v9 = vsub.f32 %v1563_v33, %v3965_v57 }
  0x39   : > { %v552_v5 = vand.u32 4294901760, %v551_v55  ;;  %v4686_v8 = vand.u32 4294901760, %v3963_v56  ;;  %v1566_v15 = vsel %vm413_vm1, %v3627_v58, 0  ;;  %3313 = vmatprep.subr.mxu1 %v3826_v2  ;;  %3157 = vmatprep.subr.mxu0 %v3826_v2  ;;  %v273_v17 = vsub.f32 15.0, %v257_v0 }
  0x3a   : > { %3266 = vmatprep.mubr.f32.mxu1 %v1691_v59  ;;  %v336_v52 = vadd.f32 1.0, %v320_v62  ;;  %v3981_v16 = vand.u32 4294901760, %v1566_v15  ;;  %v390_v12 = vmul.f32 1.442695, %v369_v61  ;;  %v4683_v22 = vand.u32 4294901760, %v3976_v9 }
  0x3b   : > { %3110 = vmatprep.mubr.f32.mxu0 %v552_v5  ;;  %v561_v19 = vsub.f32 %v3963_v56, %v4686_v8  ;;  %v3989_v23 = vmul.f32 0.2, %v178_v4  ;;  %v370_v26 = vsub.f32 0.0, %v178_v4  ;;  %v289_v49 = vmul.f32 %v273_v17, %v3886_v60 }
  0x3c   : > { %v352_v31 = vsel %vm240_vm5, %v336_v52, 0.0  ;;  %v3994_v32 = vsub.f32 %v1566_v15, %v3981_v16  ;;  %3628 = vpow2.f32 %v390_v12  ;;  %v1700_v13 = vsub.f32 %v3976_v9, %v4683_v22 }
  0x3d   : > { %v562_v61 = vand.u32 4294901760, %v561_v19  ;;  %v427_v34 = vsel %vm413_vm1, %v352_v31, 0  ;;  %vm241_vm6 = vcmp.lt.f32.partialorder %v3886_v60, 1.0  ;;  %v305_v37 = vadd.f32 -10.0, %v289_v49 }
  0x3e   : > { %v4002_v38 = vand.u32 4294901760, %v427_v34  ;;  %v4682_v39 = vand.u32 4294901760, %v3994_v32  ;;  %v1701_v42 = vand.u32 4294901760, %v1700_v13  ;;  %v210_v43 = vmul.f32 %v3989_v23, %v3989_v23 }
  0x3f   : > { %3111 = vmatmul.mubr.f32.gmra.mrb[2].mxu0 %v562_v61  ;;  %v258_v45 = vmul.f32 6.0, %v3989_v23  ;;  %v392_v46 = vmul.f32 1.442695, %v370_v26  ;;  %v321_v33 = vmul.f32 %v305_v37, %v225_v63  ;;  %vm242_vm7 = vcmp.lt.f32.partialorder %v3989_v23, 1.0  ;;  %v181_v61 = vld [vmem:[%s3836_s30 + $0x48] sm:$0xff] }
  0x40   : > { %v4011_v47 = vsub.f32 %v427_v34, %v4002_v38  ;;  %v1710_v51 = vsub.f32 %v3994_v32, %v4682_v39  ;;  %v4017_v53 = vmul.f32 0.2, %v179_v36  ;;  %3267 = vmatmul.mubr.f32.gmra.mrb[2].mxu1 %v1701_v42  ;;  %v371_v55 = vsub.f32 0.0, %v179_v36 }
  0x41   : > { %v274_v54 = vsub.f32 15.0, %v258_v45  ;;  %3630 = vpow2.f32 %v392_v46  ;;  %v4019_v58 = vmul.f32 0.2, %v180_v41  ;;  %v337_v0 = vadd.f32 1.0, %v321_v33 }
  0x42   : > { %v4684_v59 = vand.u32 4294901760, %v4011_v47  ;;  %v1711_v62 = vand.u32 4294901760, %v1710_v51  ;;  %v211_v4 = vmul.f32 %v4017_v53, %v4017_v53  ;;  %v226_v63 = vmul.f32 %v210_v43, %v3989_v23 }
  0x43   : > { %v290_v5 = vmul.f32 %v274_v54, %v3989_v23  ;;  %v259_v15 = vmul.f32 6.0, %v4017_v53  ;;  %v394_v52 = vmul.f32 1.442695, %v371_v55  ;;  %v353_v12 = vsel %vm241_vm6, %v337_v0, 0.0 }
  0x44   : > { %v571_v17 = vsub.f32 %v4011_v47, %v4684_v59  ;;  %3269 = vmatprep.mubr.f32.mxu1 %v1711_v62  ;;  %vm243_vm8 = vcmp.lt.f32.partialorder %v4017_v53, 1.0  ;;  %v212_v19 = vmul.f32 %v4019_v58, %v4019_v58  ;;  %v430_v26 = vsel %vm413_vm1, %v353_v12, 0 }
  0x45   : > { %v306_v31 = vadd.f32 -10.0, %v290_v5  ;;  %v275_v49 = vsub.f32 15.0, %v259_v15  ;;  %3632 = vpow2.f32 %v394_v52  ;;  %v4037_v36 = vand.u32 4294901760, %v430_v26 }
  0x46   : > { %v3629_v13 = vpop.eup %3628  ;;  %v572_v34 = vand.u32 4294901760, %v571_v17  ;;  %v227_v37 = vmul.f32 %v211_v4, %v4017_v53  ;;  %v228_v60 = vmul.f32 %v212_v19, %v4019_v58  ;;  %v260_v46 = vmul.f32 6.0, %v4019_v58 }
  0x47   : > { %v1569_v42 = vsel %vm413_vm1, %v3629_v13, 0  ;;  %v322_v43 = vmul.f32 %v306_v31, %v226_v63  ;;  %v291_v45 = vmul.f32 %v275_v49, %v4017_v53  ;;  %v4045_v51 = vsub.f32 %v430_v26, %v4037_v36 }
  0x48   : > { %3113 = vmatprep.mubr.f32.mxu0 %v572_v34  ;;  %v4047_v33 = vand.u32 4294901760, %v1569_v42  ;;  %v372_v54 = vsub.f32 0.0, %v180_v41  ;;  %v4049_v55 = vmul.f32 0.2, %v181_v61  ;;  %vm244_vm9 = vcmp.lt.f32.partialorder %v4019_v58, 1.0 }
  0x49   : > { %4756 = vst [vmem:[#allocation5_spill] sm:$0xff] %v4045_v51  ;;  %v338_v62 = vadd.f32 1.0, %v322_v43  ;;  %v307_v0 = vadd.f32 -10.0, %v291_v45  ;;  %v276_v4 = vsub.f32 15.0, %v260_v46  ;;  %v4680_v63 = vand.u32 4294901760, %v4045_v51 }
  0x4a   : > { %v4054_v5 = vsub.f32 %v1569_v42, %v4047_v33  ;;  %v396_v15 = vmul.f32 1.442695, %v372_v54  ;;  %v213_v52 = vmul.f32 %v4049_v55, %v4049_v55  ;;  %v373_v26 = vsub.f32 0.0, %v181_v61 }
  0x4b   : > { %v3631_v17 = vpop.eup %3630  ;;  %v354_v41 = vsel %vm242_vm7, %v338_v62, 0.0  ;;  %v323_v12 = vmul.f32 %v307_v0, %v227_v37  ;;  %v292_v19 = vmul.f32 %v276_v4, %v4019_v58  ;;  %v581_v31 = vsub.f32 %v4045_v51, %v4680_v63 }
  0x4c   : > { %4757 = vst [vmem:[#allocation6_spill] sm:$0xff] %v4054_v5  ;;  %v4678_v49 = vand.u32 4294901760, %v4054_v5  ;;  %v433_v13 = vsel %vm413_vm1, %v354_v41, 0  ;;  %v1572_v34 = vsel %vm413_vm1, %v3631_v17, 0  ;;  %3634 = vpow2.f32 %v396_v15  ;;  %v182_v41 = vld [vmem:[%s3836_s30 + $0x50] sm:$0xff] }
  0x4d   : > { %v4067_v42 = vand.u32 4294901760, %v433_v13  ;;  %v4069_v43 = vand.u32 4294901760, %v1572_v34  ;;  %v339_v23 = vadd.f32 1.0, %v323_v12  ;;  %v308_v37 = vadd.f32 -10.0, %v292_v19 }
  0x4e   : > { %v582_v45 = vand.u32 4294901760, %v581_v31  ;;  %v1720_v61 = vsub.f32 %v4054_v5, %v4678_v49  ;;  %v229_v46 = vmul.f32 %v213_v52, %v4049_v55  ;;  %v261_v52 = vmul.f32 6.0, %v4049_v55 }
  0x4f   : > { %v3633_v54 = vpop.eup %3632  ;;  %v4076_v62 = vsub.f32 %v433_v13, %v4067_v42  ;;  %v4079_v0 = vsub.f32 %v1572_v34, %v4069_v43  ;;  %v355_v4 = vsel %vm243_vm8, %v339_v23, 0.0  ;;  %v324_v17 = vmul.f32 %v308_v37, %v228_v60 }
  0x50   : > { %3114 = vmatmul.mubr.f32.gmra.mrb[4].mxu0 %v582_v45  ;;  %v1721_v12 = vand.u32 4294901760, %v1720_v61  ;;  %v436_v19 = vsel %vm413_vm1, %v355_v4, 0  ;;  %v1575_v15 = vsel %vm413_vm1, %v3633_v54, 0  ;;  %v277_v60 = vsub.f32 15.0, %v261_v52 }
  0x51   : > { %4758 = vst [vmem:[#allocation7_spill] sm:$0xff] %v4076_v62  ;;  %4759 = vst [vmem:[#allocation8_spill] sm:$0xff] %v4079_v0  ;;  %v4679_v31 = vand.u32 4294901760, %v4076_v62  ;;  %v4681_v13 = vand.u32 4294901760, %v4079_v0  ;;  %v4089_v49 = vand.u32 4294901760, %v436_v19  ;;  %v4091_v34 = vand.u32 4294901760, %v1575_v15 }
  0x52   : > { %3270 = vmatmul.mubr.f32.gmra.mrb[4].mxu1 %v1721_v12  ;;  %v340_v53 = vadd.f32 1.0, %v324_v17  ;;  %v398_v23 = vmul.f32 1.442695, %v373_v26  ;;  %v4093_v37 = vmul.f32 0.2, %v182_v41  ;;  %v293_v26 = vmul.f32 %v277_v60, %v4049_v55 }
  0x53   : > { %v591_v45 = vsub.f32 %v4076_v62, %v4679_v31  ;;  %v1730_v61 = vsub.f32 %v4079_v0, %v4681_v13  ;;  %v4102_v54 = vsub.f32 %v436_v19, %v4089_v49  ;;  %v4105_v4 = vsub.f32 %v1575_v15, %v4091_v34  ;;  %v183_v19 = vld [vmem:[%s3836_s30 + $0x58] sm:$0xff] }
  0x54   : > { %v356_v17 = vsel %vm244_vm9, %v340_v53, 0.0  ;;  %3636 = vpow2.f32 %v398_v23  ;;  %v214_v12 = vmul.f32 %v4093_v37, %v4093_v37  ;;  %vm245_vm10 = vcmp.lt.f32.partialorder %v4049_v55, 1.0 }
  0x55   : > { %4760 = vst [vmem:[#allocation9_spill] sm:$0xff] %v4102_v54  ;;  %4761 = vst [vmem:[#allocation10_spill] sm:$0xff] %v4105_v4  ;;  %v592_v52 = vand.u32 4294901760, %v591_v45  ;;  %v1731_v31 = vand.u32 4294901760, %v1730_v61  ;;  %v4685_v63 = vand.u32 4294901760, %v4102_v54  ;;  %v4687_v13 = vand.u32 4294901760, %v4105_v4 }
  0x56   : > { %v439_v39 = vsel %vm413_vm1, %v356_v17, 0  ;;  %v309_v15 = vadd.f32 -10.0, %v293_v26  ;;  %v230_v58 = vmul.f32 %v214_v12, %v4093_v37  ;;  %v262_v45 = vmul.f32 6.0, %v4093_v37  ;;  %v3635_v61 = vpop.eup %3634 }
  0x57   : > { %3116 = vmatprep.mubr.f32.mxu0 %v592_v52  ;;  %3272 = vmatprep.mubr.f32.mxu1 %v1731_v31  ;;  %v601_v53 = vsub.f32 %v4102_v54, %v4685_v63  ;;  %v1740_v60 = vsub.f32 %v4105_v4, %v4687_v13  ;;  %v4124_v23 = vand.u32 4294901760, %v439_v39  ;;  %v374_v22 = vsub.f32 0.0, %v182_v41 }
  0x58   : > { %v325_v17 = vmul.f32 %v309_v15, %v229_v46  ;;  %v4127_v26 = vmul.f32 0.2, %v183_v19  ;;  %v375_v12 = vsub.f32 0.0, %v183_v19  ;;  %v1578_v63 = vsel %vm413_vm1, %v3635_v61, 0 }
  0x59   : > { %v602_v52 = vand.u32 4294901760, %v601_v53  ;;  %v1741_v31 = vand.u32 4294901760, %v1740_v60  ;;  %v4130_v59 = vsub.f32 %v439_v39, %v4124_v23  ;;  %v4133_v8 = vand.u32 4294901760, %v1578_v63 }
  0x5a   : > { %v341_v13 = vadd.f32 1.0, %v325_v17  ;;  %v278_v44 = vsub.f32 15.0, %v262_v45  ;;  %v400_v29 = vmul.f32 1.442695, %v374_v22  ;;  %vm246_vm11 = vcmp.lt.f32.partialorder %v4093_v37, 1.0  ;;  %v184_v22 = vld [vmem:[%s3836_s30 + $0x60] sm:$0xff] }
  0x5b   : > { %4762 = vst [vmem:[#allocation11_spill] sm:$0xff] %v4130_v59  ;;  %3117 = vmatmul.mubr.f32.gmra.mrb[6].mxu0 %v602_v52  ;;  %3273 = vmatmul.mubr.f32.gmra.mrb[6].mxu1 %v1741_v31  ;;  %v4692_v46 = vand.u32 4294901760, %v4130_v59  ;;  %v215_v41 = vmul.f32 %v4127_v26, %v4127_v26  ;;  %v263_v39 = vmul.f32 6.0, %v4127_v26  ;;  %v4141_v19 = vsub.f32 %v1578_v63, %v4133_v8 }
  0x5c   : > { %v357_v15 = vsel %vm245_vm10, %v341_v13, 0.0  ;;  %v294_v53 = vmul.f32 %v278_v44, %v4093_v37  ;;  %3638 = vpow2.f32 %v400_v29  ;;  %v402_v13 = vmul.f32 1.442695, %v375_v12 }
  0x5d   : > { %4763 = vst [vmem:[#allocation12_spill] sm:$0xff] %v4141_v19  ;;  %v611_v60 = vsub.f32 %v4130_v59, %v4692_v46  ;;  %v442_v45 = vsel %vm413_vm1, %v357_v15, 0  ;;  %v231_v61 = vmul.f32 %v215_v41, %v4127_v26  ;;  %v279_v17 = vsub.f32 15.0, %v263_v39 }
  0x5e   : > { %v3637_v52 = vpop.eup %3636  ;;  %v4693_v63 = vand.u32 4294901760, %v4141_v19  ;;  %v4153_v31 = vand.u32 4294901760, %v442_v45  ;;  %v310_v55 = vadd.f32 -10.0, %v294_v53  ;;  %v4157_v28 = vmul.f32 0.2, %v184_v22 }
  0x5f   : > { %v612_v44 = vand.u32 4294901760, %v611_v60  ;;  %v1581_v29 = vsel %vm413_vm1, %v3637_v52, 0  ;;  %v295_v48 = vmul.f32 %v279_v17, %v4127_v26  ;;  %vm247_vm12 = vcmp.lt.f32.partialorder %v4127_v26, 1.0  ;;  %v185_v60 = vld [vmem:[%s3836_s30 + $0x68] sm:$0xff] }
  0x60   : > { %v1750_v41 = vsub.f32 %v4141_v19, %v4693_v63  ;;  %v4163_v39 = vsub.f32 %v442_v45, %v4153_v31  ;;  %v4165_v15 = vand.u32 4294901760, %v1581_v29  ;;  %v326_v46 = vmul.f32 %v310_v55, %v230_v58 }
  0x61   : > { %3119 = vmatprep.mubr.f32.mxu0 %v612_v44  ;;  %v311_v12 = vadd.f32 -10.0, %v295_v48  ;;  %3640 = vpow2.f32 %v402_v13  ;;  %v216_v53 = vmul.f32 %v4157_v28, %v4157_v28  ;;  %v264_v58 = vmul.f32 6.0, %v4157_v28 }
  0x62   : > { %4764 = vst [vmem:[#allocation13_spill] sm:$0xff] %v4163_v39  ;;  %v1751_v17 = vand.u32 4294901760, %v1750_v41  ;;  %v4696_v52 = vand.u32 4294901760, %v4163_v39  ;;  %v4173_v63 = vsub.f32 %v1581_v29, %v4165_v15  ;;  %v342_v45 = vadd.f32 1.0, %v326_v46 }
  0x63   : > { %v327_v25 = vmul.f32 %v311_v12, %v231_v61  ;;  %v232_v24 = vmul.f32 %v216_v53, %v4157_v28  ;;  %v376_v55 = vsub.f32 0.0, %v184_v22  ;;  %v4183_v41 = vmul.f32 0.2, %v185_v60 }
  0x64   : > { %4765 = vst [vmem:[#allocation14_spill] sm:$0xff] %v4173_v63  ;;  %3275 = vmatprep.mubr.f32.mxu1 %v1751_v17  ;;  %v621_v48 = vsub.f32 %v4163_v39, %v4696_v52  ;;  %v4697_v13 = vand.u32 4294901760, %v4173_v63  ;;  %v358_v44 = vsel %vm246_vm11, %v342_v45, 0.0  ;;  %v280_v29 = vsub.f32 15.0, %v264_v58 }
  0x65   : > { %v445_v46 = vsel %vm413_vm1, %v358_v44, 0  ;;  %v343_v61 = vadd.f32 1.0, %v327_v25  ;;  %v404_v12 = vmul.f32 1.442695, %v376_v55  ;;  %v217_v37 = vmul.f32 %v4183_v41, %v4183_v41 }
  0x66   : > { %v3639_v53 = vpop.eup %3638  ;;  %v622_v22 = vand.u32 4294901760, %v621_v48  ;;  %v1760_v17 = vsub.f32 %v4173_v63, %v4697_v13  ;;  %v4189_v52 = vand.u32 4294901760, %v445_v46  ;;  %v296_v25 = vmul.f32 %v280_v29, %v4157_v28  ;;  %v186_v63 = vld [vmem:[%s3836_s30 + $0x70] sm:$0xff] }
  0x67   : > { %v1584_v45 = vsel %vm413_vm1, %v3639_v53, 0  ;;  %v359_v44 = vsel %vm247_vm12, %v343_v61, 0.0  ;;  %3642 = vpow2.f32 %v404_v12  ;;  %vm248_vm13 = vcmp.lt.f32.partialorder %v4157_v28, 1.0 }
  0x68   : > { %3120 = vmatmul.mubr.f32.gmra.mrb[8].mxu0 %v622_v22  ;;  %v1761_v58 = vand.u32 4294901760, %v1760_v17  ;;  %v4198_v55 = vsub.f32 %v445_v46, %v4189_v52  ;;  %v4200_v48 = vand.u32 4294901760, %v1584_v45  ;;  %v448_v13 = vsel %vm413_vm1, %v359_v44, 0 }
  0x69   : > { %v4204_v39 = vand.u32 4294901760, %v448_v13  ;;  %v312_v53 = vadd.f32 -10.0, %v296_v25  ;;  %v265_v29 = vmul.f32 6.0, %v4183_v41  ;;  %v377_v46 = vsub.f32 0.0, %v185_v60 }
  0x6a   : > { %4766 = vst [vmem:[#allocation15_spill] sm:$0xff] %v4198_v55  ;;  %3276 = vmatmul.mubr.f32.gmra.mrb[8].mxu1 %v1761_v58  ;;  %v4710_v26 = vand.u32 4294901760, %v4198_v55  ;;  %v4209_v61 = vsub.f32 %v1584_v45, %v4200_v48  ;;  %v233_v44 = vmul.f32 %v217_v37, %v4183_v41  ;;  %v4216_v19 = vmul.f32 0.2, %v186_v63 }
  0x6b   : > { %v3641_v12 = vpop.eup %3640  ;;  %v4213_v22 = vsub.f32 %v448_v13, %v4204_v39  ;;  %v328_v17 = vmul.f32 %v312_v53, %v232_v24  ;;  %v281_v4 = vsub.f32 15.0, %v265_v29  ;;  %v406_v24 = vmul.f32 1.442695, %v377_v46 }
  0x6c   : > { %4767 = vst [vmem:[#allocation16_spill] sm:$0xff] %v4209_v61  ;;  %v631_v25 = vsub.f32 %v4198_v55, %v4710_v26  ;;  %v4713_v58 = vand.u32 4294901760, %v4209_v61  ;;  %v1587_v45 = vsel %vm413_vm1, %v3641_v12, 0  ;;  %v378_v26 = vsub.f32 0.0, %v186_v63 }
  0x6d   : > { %4768 = vst [vmem:[#allocation17_spill] sm:$0xff] %v4213_v22  ;;  %v4716_v60 = vand.u32 4294901760, %v4213_v22  ;;  %v4224_v59 = vand.u32 4294901760, %v1587_v45  ;;  %v344_v13 = vadd.f32 1.0, %v328_v17  ;;  %v297_v54 = vmul.f32 %v281_v4, %v4183_v41  ;;  %v187_v4 = vld [vmem:[%s3836_s30 + $0x78] sm:$0xff] }
  0x6e   : > { %v632_v53 = vand.u32 4294901760, %v631_v25  ;;  %v1770_v37 = vsub.f32 %v4209_v61, %v4713_v58  ;;  %3644 = vpow2.f32 %v406_v24  ;;  %vm249_vm14 = vcmp.lt.f32.partialorder %v4183_v41, 1.0 }
  0x6f   : > { %v641_v12 = vsub.f32 %v4213_v22, %v4716_v60  ;;  %v4234_v29 = vsub.f32 %v1587_v45, %v4224_v59  ;;  %v360_v55 = vsel %vm248_vm13, %v344_v13, 0.0  ;;  %v313_v25 = vadd.f32 -10.0, %v297_v54 }
  0x70   : > { %3122 = vmatprep.mubr.f32.mxu0 %v632_v53  ;;  %v1771_v46 = vand.u32 4294901760, %v1770_v37  ;;  %v451_v17 = vsel %vm413_vm1, %v360_v55, 0  ;;  %v218_v45 = vmul.f32 %v4216_v19, %v4216_v19  ;;  %v266_v24 = vmul.f32 6.0, %v4216_v19 }
  0x71   : > { %4769 = vst [vmem:[#allocation18_spill] sm:$0xff] %v4234_v29  ;;  %v3643_v63 = vpop.eup %3642  ;;  %v642_v58 = vand.u32 4294901760, %v641_v12  ;;  %v4721_v61 = vand.u32 4294901760, %v4234_v29  ;;  %v4242_v60 = vand.u32 4294901760, %v451_v17  ;;  %v329_v13 = vmul.f32 %v313_v25, %v233_v44 }
  0x72   : > { %3278 = vmatprep.mubr.f32.mxu1 %v1771_v46  ;;  %v1590_v28 = vsel %vm413_vm1, %v3643_v63, 0  ;;  %v408_v55 = vmul.f32 1.442695, %v378_v26  ;;  %v203_v12 = vmul.f32 0.2, %v187_v4  ;;  %v282_v0 = vsub.f32 15.0, %v266_v24 }
  0x73   : > { %3123 = vmatmul.mubr.f32.gmra.mrb[10].mxu0 %v642_v58  ;;  %v1780_v54 = vsub.f32 %v4234_v29, %v4721_v61  ;;  %v4252_v53 = vsub.f32 %v451_v17, %v4242_v60  ;;  %v4254_v37 = vand.u32 4294901760, %v1590_v28  ;;  %v345_v22 = vadd.f32 1.0, %v329_v13 }
  0x74   : > { %3646 = vpow2.f32 %v408_v55  ;;  %v379_v46 = vsub.f32 0.0, %v187_v4  ;;  %v219_v58 = vmul.f32 %v203_v12, %v203_v12  ;;  %v234_v17 = vmul.f32 %v218_v45, %v4216_v19 }
  0x75   : > { %4770 = vst [vmem:[#allocation19_spill] sm:$0xff] %v4252_v53  ;;  %4771 = vst [vmem:[#allocation20_spill] sm:$0xff] %v4254_v37  ;;  %v1781_v63 = vand.u32 4294901760, %v1780_v54  ;;  %v4726_v44 = vand.u32 4294901760, %v4252_v53  ;;  %v4258_v26 = vsub.f32 %v1590_v28, %v4254_v37  ;;  %v361_v25 = vsel %vm249_vm14, %v345_v22, 0.0 }
  0x76   : > { %v298_v61 = vmul.f32 %v282_v0, %v4216_v19  ;;  %v267_v29 = vmul.f32 6.0, %v203_v12  ;;  %v454_v24 = vsel %vm413_vm1, %v361_v25, 0  ;;  %v410_v41 = vmul.f32 1.442695, %v379_v46 }
  0x77   : > { %3279 = vmatmul.mubr.f32.gmra.mrb[10].mxu1 %v1781_v63  ;;  %v651_v4 = vsub.f32 %v4252_v53, %v4726_v44  ;;  %v4739_v13 = vand.u32 4294901760, %v4258_v26  ;;  %v4269_v28 = vand.u32 4294901760, %v454_v24  ;;  %v235_v45 = vmul.f32 %v219_v58, %v203_v12 }
  0x78   : > { %v314_v55 = vadd.f32 -10.0, %v298_v61  ;;  %v283_v54 = vsub.f32 15.0, %v267_v29  ;;  %v3645_v22 = vpop.eup %3644  ;;  %vm250_vm15 = vcmp.lt.f32.partialorder %v4216_v19, 1.0  ;;  %3648 = vpow2.f32 %v410_v41 }
  0x79   : > { %4772 = vst [vmem:[#allocation21_spill] sm:$0xff] %v4269_v28  ;;  %v652_v5 = vand.u32 4294901760, %v651_v4  ;;  %v1790_v0 = vsub.f32 %v4258_v26, %v4739_v13  ;;  %v4275_v63 = vsub.f32 %v454_v24, %v4269_v28  ;;  %v1593_v44 = vsel %vm413_vm1, %v3645_v22, 0  ;;  %v4790_v13 = vld [vmem:[#allocation17_spill] sm:$0xff] }
  0x7a   : > { %v330_v53 = vmul.f32 %v314_v55, %v234_v17  ;;  %v299_v62 = vmul.f32 %v283_v54, %v203_v12  ;;  %v4278_v51 = vand.u32 4294901760, %v1593_v44  ;;  %vm251_vm0 = vcmp.lt.f32.partialorder %v203_v12, 1.0 }
  0x7b   : > { %3125 = vmatprep.mubr.f32.mxu0 %v652_v5  ;;  %v1791_v25 = vand.u32 4294901760, %v1790_v0  ;;  %v4738_v61 = vand.u32 4294901760, %v4275_v63 }
  0x7c   : > { %4773 = vst [vmem:[#allocation22_spill] sm:$0xff] %v4278_v51  ;;  %v346_v29 = vadd.f32 1.0, %v330_v53  ;;  %v315_v46 = vadd.f32 -10.0, %v299_v62  ;;  %v4283_v58 = vsub.f32 %v1593_v44, %v4278_v51 }
  0x7d   : > { %3281 = vmatprep.mubr.f32.mxu1 %v1791_v25  ;;  %v661_v17 = vsub.f32 %v4275_v63, %v4738_v61  ;;  %v4789_v61 = vld [vmem:[#allocation16_spill] sm:$0xff] }
  0x7e   : > { %v3647_v4 = vpop.eup %3646  ;;  %v362_v5 = vsel %vm250_vm15, %v346_v29, 0.0  ;;  %v331_v24 = vmul.f32 %v315_v46, %v235_v45  ;;  %v4733_v55 = vand.u32 4294901760, %v4283_v58 }
  0x7f   : > { %v457_v19 = vsel %vm413_vm1, %v362_v5, 0  ;;  %v1596_v54 = vsel %vm413_vm1, %v3647_v4, 0  ;;  %v662_v53 = vand.u32 4294901760, %v661_v17 }
  0x80   : > { %v4291_v62 = vand.u32 4294901760, %v457_v19  ;;  %v4293_v41 = vand.u32 4294901760, %v1596_v54  ;;  %v347_v44 = vadd.f32 1.0, %v331_v24  ;;  %v1800_v22 = vsub.f32 %v4283_v58, %v4733_v55 }
  0x81   : > { %3126 = vmatmul.mubr.f32.gmra.mrb[12].mxu0 %v662_v53 }
  0x82   : > { %4774 = vst [vmem:[#allocation23_spill] sm:$0xff] %v4291_v62  ;;  %4775 = vst [vmem:[#allocation24_spill] sm:$0xff] %v4293_v41  ;;  %v4299_v0 = vsub.f32 %v457_v19, %v4291_v62  ;;  %v4302_v45 = vsub.f32 %v1596_v54, %v4293_v41  ;;  %v363_v25 = vsel %vm251_vm0, %v347_v44, 0.0  ;;  %v1801_v29 = vand.u32 4294901760, %v1800_v22  ;;  %v3649_v5 = vpop.eup %3648 }
  0x83   : > { %v460_v12 = vsel %vm413_vm1, %v363_v25, 0  ;;  %v1599_v53 = vsel %vm413_vm1, %v3649_v5, 0 }
  0x84   : > { %v4735_v46 = vand.u32 4294901760, %v4299_v0  ;;  %v4734_v4 = vand.u32 4294901760, %v4302_v45  ;;  %v4307_v17 = vand.u32 4294901760, %v460_v12  ;;  %3282 = vmatmul.mubr.f32.gmra.mrb[12].mxu1 %v1801_v29  ;;  %v4319_v44 = vand.u32 4294901760, %v1599_v53 }
  0x86   : > { %4776 = vst [vmem:[#allocation25_spill] sm:$0xff] %v4307_v17  ;;  %v671_v24 = vsub.f32 %v4299_v0, %v4735_v46  ;;  %v1810_v19 = vsub.f32 %v4302_v45, %v4734_v4  ;;  %v4316_v54 = vsub.f32 %v460_v12, %v4307_v17  ;;  %4777 = vst [vmem:[#allocation26_spill] sm:$0xff] %v4319_v44 }
  0x87   : > { %v4323_v29 = vsub.f32 %v1599_v53, %v4319_v44  ;;  %v4782_v53 = vld [vmem:[#allocation9_spill] sm:$0xff] }
  0x88   : > { %v672_v22 = vand.u32 4294901760, %v671_v24  ;;  %v1811_v25 = vand.u32 4294901760, %v1810_v19  ;;  %v4737_v55 = vand.u32 4294901760, %v4316_v54  ;;  %v4781_v19 = vld [vmem:[#allocation8_spill] sm:$0xff] }
  0x89   : > { %v4736_v12 = vand.u32 4294901760, %v4323_v29 }
  0x8a   : > { %3128 = vmatprep.mubr.f32.mxu0 %v672_v22  ;;  %3284 = vmatprep.mubr.f32.mxu1 %v1811_v25  ;;  %v681_v4 = vsub.f32 %v4316_v54, %v4737_v55  ;;  %v4783_v22 = vld [vmem:[#allocation11_spill] sm:$0xff]  ;;  %v4784_v25 = vld [vmem:[#allocation10_spill] sm:$0xff] }
  0x8b   : > { %v1820_v5 = vsub.f32 %v4323_v29, %v4736_v12  ;;  %v4787_v12 = vld [vmem:[#allocation15_spill] sm:$0xff]  ;;  %v4788_v55 = vld [vmem:[#allocation14_spill] sm:$0xff] }
  0x8c   : > { %v682_v46 = vand.u32 4294901760, %v681_v4  ;;  %v4780_v4 = vld [vmem:[#allocation6_spill] sm:$0xff] }
  0x8d   : > { %v1821_v24 = vand.u32 4294901760, %v1820_v5  ;;  %v4785_v5 = vld [vmem:[#allocation12_spill] sm:$0xff] }
  0x8e   : > { %3129 = vmatmul.mubr.f32.gmra.mrb[14].mxu0 %v682_v46  ;;  %v4779_v46 = vld [vmem:[#allocation7_spill] sm:$0xff] }
  0x8f   : > { %3133 = vmatprep.mubr.f32.mxu0 %v3893_v6  ;;  %3285 = vmatmul.mubr.f32.gmra.mrb[14].mxu1 %v1821_v24  ;;  %v4786_v24 = vld [vmem:[#allocation13_spill] sm:$0xff] }
  0x90   : > { %3289 = vmatprep.mubr.f32.mxu1 %v3895_v7 }
  0x92   : > { %3134 = vmatmul.mubr.f32.vlgmr.msra.gmra.mrb[0].mxu0 %v3899_v11 }
  0x93   : > { %3136 = vmatprep.mubr.f32.mxu0 %v3925_v30  ;;  %3158 = vmatpush3.msra.mxu0 %v3826_v2 }
  0x94   : > { %3183 = vmatprep.subr.mxu0 %v3821_v1  ;;  %3290 = vmatmul.mubr.f32.vlgmr.msra.gmra.mrb[0].mxu1 %v3901_v14 }
  0x95   : > { %3314 = vmatpush3.msra.mxu1 %v3826_v2  ;;  %3292 = vmatprep.mubr.f32.mxu1 %v3921_v27  ;;  %v4778_v2 = vld [vmem:[#allocation5_spill] sm:$0xff] }
  0x96   : > { %3137 = vmatmul.mubr.f32.gmra.mrb[2].mxu0 %v3951_v50  ;;  %3339 = vmatprep.subr.mxu1 %v3821_v1 }
  0x97   : > { %3139 = vmatprep.mubr.f32.mxu0 %v4002_v38 }
  0x98   : > { %3293 = vmatmul.mubr.f32.gmra.mrb[2].mxu1 %v3965_v57 }
  0x99   : > { %3295 = vmatprep.mubr.f32.mxu1 %v3981_v16 }
  0x9a   : > { %3140 = vmatmul.mubr.f32.gmra.mrb[4].mxu0 %v4037_v36 }
  0x9b   : > { %3142 = vmatprep.mubr.f32.mxu0 %v4067_v42 }
  0x9c   : > { %3296 = vmatmul.mubr.f32.gmra.mrb[4].mxu1 %v4047_v33 }
  0x9d   : > { %3298 = vmatprep.mubr.f32.mxu1 %v4069_v43 }
  0x9e   : > { %3143 = vmatmul.mubr.f32.gmra.mrb[6].mxu0 %v4089_v49 }
  0x9f   : > { %3145 = vmatprep.mubr.f32.mxu0 %v4124_v23 }
  0xa0   : > { %3299 = vmatmul.mubr.f32.gmra.mrb[6].mxu1 %v4091_v34 }
  0xa1   : > { %3301 = vmatprep.mubr.f32.mxu1 %v4133_v8 }
  0xa2   : > { %3146 = vmatmul.mubr.f32.gmra.mrb[8].mxu0 %v4153_v31 }
  0xa3   : > { %3148 = vmatprep.mubr.f32.mxu0 %v4189_v52 }
  0xa4   : > { %3302 = vmatmul.mubr.f32.gmra.mrb[8].mxu1 %v4165_v15 }
  0xa5   : > { %3304 = vmatprep.mubr.f32.mxu1 %v4200_v48 }
  0xa6   : > { %3149 = vmatmul.mubr.f32.gmra.mrb[10].mxu0 %v4204_v39 }
  0xa7   : > { %3151 = vmatprep.mubr.f32.mxu0 %v4242_v60 }
  0xa8   : > { %3305 = vmatmul.mubr.f32.gmra.mrb[10].mxu1 %v4224_v59 }
  0xa9   : > { %3307 = vmatprep.mubr.f32.mxu1 %v4254_v37  ;;  %v4797_v37 = vand.u32 4294901760, %v3913_v21 }
  0xaa   : > { %3152 = vmatmul.mubr.f32.gmra.mrb[12].mxu0 %v4269_v28  ;;  %v4796_v28 = vand.u32 4294901760, %v3944_v40 }
  0xab   : > { %3154 = vmatprep.mubr.f32.mxu0 %v4291_v62  ;;  %v4795_v62 = vand.u32 4294901760, %v3910_v20 }
  0xac   : > { %3308 = vmatmul.mubr.f32.gmra.mrb[12].mxu1 %v4278_v51  ;;  %v4794_v51 = vand.u32 4294901760, %v3907_v10 }
  0xad   : > { %3310 = vmatprep.mubr.f32.mxu1 %v4293_v41  ;;  %v4793_v41 = vand.u32 4294901760, %v3904_v18 }
  0xae   : > { %3155 = vmatmul.mubr.f32.gmra.mrb[14].mxu0 %v4307_v17  ;;  %v4792_v17 = vld [vmem:[#allocation18_spill] sm:$0xff] }
  0xaf   : > { %3159 = vmatprep.mubr.f32.mxu0 %v3904_v18  ;;  %v4798_v18 = vand.u32 4294901760, %v3934_v35 }
  0xb0   : > { %3311 = vmatmul.mubr.f32.gmra.mrb[14].mxu1 %v4319_v44  ;;  %v4791_v44 = vld [vmem:[#allocation19_spill] sm:$0xff] }
  0xb1   : > { %3315 = vmatprep.mubr.f32.mxu1 %v3907_v10  ;;  %v4799_v10 = vand.u32 4294901760, %v3963_v56 }
  0xb2   : > { %3160 = vmatmul.mubr.f32.vlgmr.msra.gmra.mrb[0].mxu0 %v3910_v20  ;;  %v4800_v20 = vand.u32 4294901760, %v4011_v47 }
  0xb3   : > { %3162 = vmatprep.mubr.f32.mxu0 %v3944_v40  ;;  %3184 = vmatpush3.msra.mxu0 %v3821_v1  ;;  %v4801_v40 = vand.u32 4294901760, %v3976_v9 }
  0xb4   : > { %3316 = vmatmul.mubr.f32.vlgmr.msra.gmra.mrb[0].mxu1 %v3913_v21  ;;  %3209 = vmatprep.subr.mxu0 %v3831_v3  ;;  %v4802_v21 = vand.u32 4294901760, %v3994_v32 }
  0xb5   : > { %3340 = vmatpush3.msra.mxu1 %v3821_v1  ;;  %3318 = vmatprep.mubr.f32.mxu1 %v3934_v35  ;;  %v4805_v35 = vand.u32 4294901760, %v4780_v4 }
  0xb6   : > { %3163 = vmatmul.mubr.f32.gmra.mrb[2].mxu0 %v3963_v56  ;;  %3365 = vmatprep.subr.mxu1 %v3831_v3  ;;  %v4806_v56 = vand.u32 4294901760, %v4781_v19 }
  0xb7   : > { %3165 = vmatprep.mubr.f32.mxu0 %v4011_v47  ;;  %v4807_v47 = vand.u32 4294901760, %v4782_v53 }
  0xb8   : > { %3319 = vmatmul.mubr.f32.gmra.mrb[2].mxu1 %v3976_v9  ;;  %v4808_v9 = vand.u32 4294901760, %v4783_v22 }
  0xb9   : > { %3321 = vmatprep.mubr.f32.mxu1 %v3994_v32  ;;  %v4809_v32 = vand.u32 4294901760, %v4784_v25 }
  0xba   : > { %3166 = vmatmul.mubr.f32.gmra.mrb[4].mxu0 %v4778_v2 }
  0xbb   : > { %3168 = vmatprep.mubr.f32.mxu0 %v4779_v46 }
  0xbc   : > { %3322 = vmatmul.mubr.f32.gmra.mrb[4].mxu1 %v4780_v4  ;;  %v4816_v4 = vand.u32 4294901760, %v4791_v44 }
  0xbd   : > { %3324 = vmatprep.mubr.f32.mxu1 %v4781_v19  ;;  %v4817_v19 = vand.u32 4294901760, %v4792_v17 }
  0xbe   : > { %3169 = vmatmul.mubr.f32.gmra.mrb[6].mxu0 %v4782_v53  ;;  %v4818_v53 = vand.u32 4294901760, %v4258_v26 }
  0xbf   : > { %3171 = vmatprep.mubr.f32.mxu0 %v4783_v22 }
  0xc0   : > { %3325 = vmatmul.mubr.f32.gmra.mrb[6].mxu1 %v4784_v25 }
  0xc1   : > { %3327 = vmatprep.mubr.f32.mxu1 %v4785_v5 }
  0xc2   : > { %3172 = vmatmul.mubr.f32.gmra.mrb[8].mxu0 %v4786_v24 }
  0xc3   : > { %3174 = vmatprep.mubr.f32.mxu0 %v4787_v12 }
  0xc4   : > { %3328 = vmatmul.mubr.f32.gmra.mrb[8].mxu1 %v4788_v55 }
  0xc5   : > { %3330 = vmatprep.mubr.f32.mxu1 %v4789_v61 }
  0xc6   : > { %3175 = vmatmul.mubr.f32.gmra.mrb[10].mxu0 %v4790_v13 }
  0xc7   : > { %3177 = vmatprep.mubr.f32.mxu0 %v4791_v44  ;;  %v4823_v44 = vand.u32 4294901760, %v4316_v54 }
  0xc8   : > { %3331 = vmatmul.mubr.f32.gmra.mrb[10].mxu1 %v4792_v17  ;;  %v4830_v17 = vld [vmem:[#allocation25_spill] sm:$0xff] }
  0xc9   : > { %3333 = vmatprep.mubr.f32.mxu1 %v4258_v26  ;;  %v4824_v26 = vand.u32 4294901760, %v4323_v29 }
  0xca   : > { %3178 = vmatmul.mubr.f32.gmra.mrb[12].mxu0 %v4275_v63 }
  0xcb   : > { %3180 = vmatprep.mubr.f32.mxu0 %v4299_v0 }
  0xcc   : > { %3334 = vmatmul.mubr.f32.gmra.mrb[12].mxu1 %v4283_v58 }
  0xcd   : > { %3336 = vmatprep.mubr.f32.mxu1 %v4302_v45 }
  0xce   : > { %3181 = vmatmul.mubr.f32.gmra.mrb[14].mxu0 %v4316_v54  ;;  %v4831_v54 = vld [vmem:[#allocation26_spill] sm:$0xff] }
  0xcf   : > { %3185 = vmatprep.mubr.f32.mxu0 %v4793_v41  ;;  %v4813_v41 = vand.u32 4294901760, %v4788_v55  ;;  %v4820_v55 = vand.u32 4294901760, %v4299_v0  ;;  %v4828_v0 = vld [vmem:[#allocation22_spill] sm:$0xff] }
  0xd0   : > { %3337 = vmatmul.mubr.f32.gmra.mrb[14].mxu1 %v4323_v29 }
  0xd1   : > { %3341 = vmatprep.mubr.f32.mxu1 %v4794_v51  ;;  %v4803_v51 = vand.u32 4294901760, %v4778_v2  ;;  %v4814_v2 = vand.u32 4294901760, %v4789_v61  ;;  %v4821_v61 = vand.u32 4294901760, %v4283_v58  ;;  %v4827_v58 = vld [vmem:[#allocation23_spill] sm:$0xff] }
  0xd2   : > { %3186 = vmatmul.mubr.f32.vlgmr.msra.gmra.mrb[0].mxu0 %v4795_v62  ;;  %v4812_v62 = vand.u32 4294901760, %v4787_v12  ;;  %v4819_v12 = vand.u32 4294901760, %v4275_v63  ;;  %v4826_v63 = vld [vmem:[#allocation21_spill] sm:$0xff] }
  0xd3   : > { %3188 = vmatprep.mubr.f32.mxu0 %v4796_v28  ;;  %3210 = vmatpush3.msra.mxu0 %v3831_v3  ;;  %v4811_v28 = vand.u32 4294901760, %v4786_v24 }
  0xd4   : > { %3342 = vmatmul.mubr.f32.vlgmr.msra.gmra.mrb[0].mxu1 %v4797_v37  ;;  %3235 = vmatprep.subr.mxu0 %v3821_v1  ;;  %v4810_v37 = vand.u32 4294901760, %v4785_v5 }
  0xd5   : > { %3366 = vmatpush3.msra.mxu1 %v3831_v3  ;;  %3344 = vmatprep.mubr.f32.mxu1 %v4798_v18  ;;  %v4804_v3 = vand.u32 4294901760, %v4779_v46  ;;  %v4815_v46 = vand.u32 4294901760, %v4790_v13  ;;  %v4822_v13 = vand.u32 4294901760, %v4302_v45  ;;  %v4829_v45 = vld [vmem:[#allocation24_spill] sm:$0xff] }
  0xd6   : > { %3189 = vmatmul.mubr.f32.gmra.mrb[2].mxu0 %v4799_v10  ;;  %3391 = vmatprep.subr.mxu1 %v3821_v1 }
  0xd7   : > { %3191 = vmatprep.mubr.f32.mxu0 %v4800_v20 }
  0xd8   : > { %3345 = vmatmul.mubr.f32.gmra.mrb[2].mxu1 %v4801_v40 }
  0xd9   : > { %3347 = vmatprep.mubr.f32.mxu1 %v4802_v21 }
  0xda   : > { %3192 = vmatmul.mubr.f32.gmra.mrb[4].mxu0 %v4803_v51 }
  0xdb   : > { %3194 = vmatprep.mubr.f32.mxu0 %v4804_v3 }
  0xdc   : > { %3348 = vmatmul.mubr.f32.gmra.mrb[4].mxu1 %v4805_v35 }
  0xdd   : > { %3350 = vmatprep.mubr.f32.mxu1 %v4806_v56 }
  0xde   : > { %3195 = vmatmul.mubr.f32.gmra.mrb[6].mxu0 %v4807_v47 }
  0xdf   : > { %3197 = vmatprep.mubr.f32.mxu0 %v4808_v9 }
  0xe0   : > { %3351 = vmatmul.mubr.f32.gmra.mrb[6].mxu1 %v4809_v32 }
  0xe1   : > { %3353 = vmatprep.mubr.f32.mxu1 %v4810_v37 }
  0xe2   : > { %3198 = vmatmul.mubr.f32.gmra.mrb[8].mxu0 %v4811_v28 }
  0xe3   : > { %3200 = vmatprep.mubr.f32.mxu0 %v4812_v62 }
  0xe4   : > { %3354 = vmatmul.mubr.f32.gmra.mrb[8].mxu1 %v4813_v41 }
  0xe5   : > { %3356 = vmatprep.mubr.f32.mxu1 %v4814_v2 }
  0xe6   : > { %3201 = vmatmul.mubr.f32.gmra.mrb[10].mxu0 %v4815_v46 }
  0xe7   : > { %3203 = vmatprep.mubr.f32.mxu0 %v4816_v4 }
  0xe8   : > { %3357 = vmatmul.mubr.f32.gmra.mrb[10].mxu1 %v4817_v19 }
  0xe9   : > { %3359 = vmatprep.mubr.f32.mxu1 %v4818_v53 }
  0xea   : > { %3204 = vmatmul.mubr.f32.gmra.mrb[12].mxu0 %v4819_v12 }
  0xeb   : > { %3206 = vmatprep.mubr.f32.mxu0 %v4820_v55 }
  0xec   : > { %3360 = vmatmul.mubr.f32.gmra.mrb[12].mxu1 %v4821_v61 }
  0xed   : > { %3362 = vmatprep.mubr.f32.mxu1 %v4822_v13 }
  0xee   : > { %3207 = vmatmul.mubr.f32.gmra.mrb[14].mxu0 %v4823_v44 }
  0xef   : > { %3211 = vmatprep.mubr.f32.mxu0 %v3893_v6 }
  0xf0   : > { %3363 = vmatmul.mubr.f32.gmra.mrb[14].mxu1 %v4824_v26 }
  0xf1   : > { %3367 = vmatprep.mubr.f32.mxu1 %v3895_v7 }
  0xf2   : > { %3212 = vmatmul.mubr.f32.vlgmr.msra.gmra.mrb[0].mxu0 %v3899_v11 }
  0xf3   : > { %3214 = vmatprep.mubr.f32.mxu0 %v3925_v30  ;;  %3236 = vmatpush3.msra.mxu0 %v3821_v1 }
  0xf4   : > { %3368 = vmatmul.mubr.f32.vlgmr.msra.gmra.mrb[0].mxu1 %v3901_v14 }
  0xf5   : > { %3392 = vmatpush3.msra.mxu1 %v3821_v1  ;;  %3370 = vmatprep.mubr.f32.mxu1 %v3921_v27  ;;  %v4825_v1 = vld [vmem:[#allocation20_spill] sm:$0xff] }
  0xf6   : > { %3215 = vmatmul.mubr.f32.gmra.mrb[2].mxu0 %v3951_v50 }
  0xf7   : > { %3217 = vmatprep.mubr.f32.mxu0 %v4002_v38 }
  0xf8   : > { %3371 = vmatmul.mubr.f32.gmra.mrb[2].mxu1 %v3965_v57 }
  0xf9   : > { %3373 = vmatprep.mubr.f32.mxu1 %v3981_v16 }
  0xfa   : > { %3218 = vmatmul.mubr.f32.gmra.mrb[4].mxu0 %v4037_v36 }
  0xfb   : > { %3220 = vmatprep.mubr.f32.mxu0 %v4067_v42 }
  0xfc   : > { %3374 = vmatmul.mubr.f32.gmra.mrb[4].mxu1 %v4047_v33 }
  0xfd   : > { %3376 = vmatprep.mubr.f32.mxu1 %v4069_v43 }
  0xfe   : > { %3221 = vmatmul.mubr.f32.gmra.mrb[6].mxu0 %v4089_v49 }
  0xff   : > { %3223 = vmatprep.mubr.f32.mxu0 %v4124_v23 }
 0x100   : > { %3377 = vmatmul.mubr.f32.gmra.mrb[6].mxu1 %v4091_v34 }
 0x101   : > { %3379 = vmatprep.mubr.f32.mxu1 %v4133_v8 }
 0x102   : > { %3224 = vmatmul.mubr.f32.gmra.mrb[8].mxu0 %v4153_v31 }
 0x103   : > { %3226 = vmatprep.mubr.f32.mxu0 %v4189_v52 }
 0x104   : > { %3380 = vmatmul.mubr.f32.gmra.mrb[8].mxu1 %v4165_v15 }
 0x105   : > { %3382 = vmatprep.mubr.f32.mxu1 %v4200_v48 }
 0x106   : > { %3227 = vmatmul.mubr.f32.gmra.mrb[10].mxu0 %v4204_v39 }
 0x107   : > { %3229 = vmatprep.mubr.f32.mxu0 %v4242_v60 }
 0x108   : > { %3383 = vmatmul.mubr.f32.gmra.mrb[10].mxu1 %v4224_v59 }
 0x109   : > { %3385 = vmatprep.mubr.f32.mxu1 %v4825_v1 }
 0x10a   : > { %3230 = vmatmul.mubr.f32.gmra.mrb[12].mxu0 %v4826_v63 }
 0x10b   : > { %3232 = vmatprep.mubr.f32.mxu0 %v4827_v58 }
 0x10c   : > { %3386 = vmatmul.mubr.f32.gmra.mrb[12].mxu1 %v4828_v0 }
 0x10d   : > { %3388 = vmatprep.mubr.f32.mxu1 %v4829_v45 }
 0x10e   : > { %3233 = vmatmul.mubr.f32.gmra.mrb[14].mxu0 %v4830_v17 }
 0x10f   : > { %3237 = vmatprep.mubr.f32.mxu0 %v3893_v6 }
 0x110   : > { %3389 = vmatmul.mubr.f32.gmra.mrb[14].mxu1 %v4831_v54 }
 0x111   : > { %3393 = vmatprep.mubr.f32.mxu1 %v3895_v7  ;;  %v4543_v7 = vld [vmem:[%s4676_s2] ss:$0 sm:$0xff] }
 0x112   : > { %3238 = vmatmul.mubr.f32.vlgmr.msra.gmra.mrb[0].mxu0 %v3899_v11 }
 0x113   : > { %3240 = vmatprep.mubr.f32.mxu0 %v3925_v30 }
 0x114   : > { %3394 = vmatmul.mubr.f32.vlgmr.msra.gmra.mrb[0].mxu1 %v3901_v14 }
 0x115   : > { %3396 = vmatprep.mubr.f32.mxu1 %v3921_v27 }
 0x116   : > { %3241 = vmatmul.mubr.f32.gmra.mrb[2].mxu0 %v3951_v50 }
 0x117   : > { %3243 = vmatprep.mubr.f32.mxu0 %v4002_v38 }
 0x118   : > { %3397 = vmatmul.mubr.f32.gmra.mrb[2].mxu1 %v3965_v57 }
 0x119   : > { %3399 = vmatprep.mubr.f32.mxu1 %v3981_v16 }
 0x11a   : > { %3244 = vmatmul.mubr.f32.gmra.mrb[4].mxu0 %v4037_v36 }
 0x11b   : > { %3246 = vmatprep.mubr.f32.mxu0 %v4067_v42 }
 0x11c   : > { %3400 = vmatmul.mubr.f32.gmra.mrb[4].mxu1 %v4047_v33 }
 0x11d   : > { %3402 = vmatprep.mubr.f32.mxu1 %v4069_v43 }
 0x11e   : > { %3247 = vmatmul.mubr.f32.gmra.mrb[6].mxu0 %v4089_v49 }
 0x11f   : > { %3249 = vmatprep.mubr.f32.mxu0 %v4124_v23 }
 0x120   : > { %3403 = vmatmul.mubr.f32.gmra.mrb[6].mxu1 %v4091_v34 }
 0x121   : > { %3405 = vmatprep.mubr.f32.mxu1 %v4133_v8 }
 0x122   : > { %3250 = vmatmul.mubr.f32.gmra.mrb[8].mxu0 %v4153_v31 }
 0x123   : > { %3252 = vmatprep.mubr.f32.mxu0 %v4189_v52 }
 0x124   : > { %3406 = vmatmul.mubr.f32.gmra.mrb[8].mxu1 %v4165_v15 }
 0x125   : > { %3408 = vmatprep.mubr.f32.mxu1 %v4200_v48 }
 0x126   : > { %3253 = vmatmul.mubr.f32.gmra.mrb[10].mxu0 %v4204_v39 }
 0x127   : > { %3255 = vmatprep.mubr.f32.mxu0 %v4242_v60 }
 0x128   : > { %3409 = vmatmul.mubr.f32.gmra.mrb[10].mxu1 %v4224_v59 }
 0x129   : > { %3411 = vmatprep.mubr.f32.mxu1 %v4825_v1 }
 0x12a   : > { %3256 = vmatmul.mubr.f32.gmra.mrb[12].mxu0 %v4826_v63 }
 0x12b   : > { %3258 = vmatprep.mubr.f32.mxu0 %v4827_v58 }
 0x12c   : > { %3412 = vmatmul.mubr.f32.gmra.mrb[12].mxu1 %v4828_v0 }
 0x12d   : > { %3414 = vmatprep.mubr.f32.mxu1 %v4829_v45 }
 0x12e   : > { %3259 = vmatmul.mubr.f32.gmra.mrb[14].mxu0 %v4830_v17 }
 0x130   : > { %3415 = vmatmul.mubr.f32.gmra.mrb[14].mxu1 %v4831_v54 }
 0x1e5   : > { %v4538_v6 = vpop.f32.mrb[0].mxu0 }
 0x1e6   : > { %v4545_v11 = vpop.f32.mrb[1].mxu0 }
 0x1e7   : > { %v3395_v14 = vpop.f32.mrb[0].mxu1 }
 0x1e8   : > { %v2700_v27 = vsub.f32 %v3395_v14, %v4543_v7  ;;  %v2598_v30 = vpop.f32.mrb[1].mxu1 }
 0x1e9   : > { %v2699_v50 = vsub.f32 %v2598_v30, %v4543_v7  ;;  %v4549_v57 = vpop.f32.mrb[2].mxu0 }
 0x1ea   : > { %v2716_v8 = vmul.f32 %v2700_v27, %v2700_v27  ;;  %v4551_v16 = vpop.f32.mrb[3].mxu0 }
 0x1eb   : > { %v2715_v38 = vmul.f32 %v2699_v50, %v2699_v50  ;;  %v3398_v59 = vpop.f32.mrb[2].mxu1 }
 0x1ec   : > { %v2732_v36 = vmul.f32 -64.871254, %v2716_v8  ;;  %v2702_v33 = vsub.f32 %v3398_v59, %v4543_v7  ;;  %v2610_v49 = vpop.f32.mrb[3].mxu1 }
 0x1ed   : > { %v2731_v42 = vmul.f32 -64.871254, %v2715_v38  ;;  %v2701_v43 = vsub.f32 %v2610_v49, %v4543_v7  ;;  %v4555_v34 = vpop.f32.mrb[4].mxu0 }
 0x1ee   : > { %v2749_v23 = vmul.f32 1.442695, %v2732_v36  ;;  %v2718_v31 = vmul.f32 %v2702_v33, %v2702_v33  ;;  %v4557_v39 = vpop.f32.mrb[5].mxu0 }
 0x1ef   : > { %v2747_v15 = vmul.f32 1.442695, %v2731_v42  ;;  %v2717_v52 = vmul.f32 %v2701_v43, %v2701_v43  ;;  %v3401_v48 = vpop.f32.mrb[4].mxu1 }
 0x1f0   : > { %3650 = vpow2.f32 %v2749_v23  ;;  %v2734_v60 = vmul.f32 -64.871254, %v2718_v31  ;;  %v2704_v29 = vsub.f32 %v3401_v48, %v4543_v7  ;;  %v2622_v22 = vpop.f32.mrb[5].mxu1 }
 0x1f1   : > { %3652 = vpow2.f32 %v2747_v15  ;;  %v2733_v25 = vmul.f32 -64.871254, %v2717_v52  ;;  %v2703_v5 = vsub.f32 %v2622_v22, %v4543_v7  ;;  %v4561_v24 = vpop.f32.mrb[6].mxu0 }
 0x1f2   : > { %v2753_v18 = vmul.f32 1.442695, %v2734_v60  ;;  %v2720_v10 = vmul.f32 %v2704_v29, %v2704_v29  ;;  %v4563_v20 = vpop.f32.mrb[7].mxu0 }
 0x1f3   : > { %v2751_v40 = vmul.f32 1.442695, %v2733_v25  ;;  %v2719_v21 = vmul.f32 %v2703_v5, %v2703_v5  ;;  %v3404_v51 = vpop.f32.mrb[6].mxu1 }
 0x1f4   : > { %3654 = vpow2.f32 %v2753_v18  ;;  %v2736_v3 = vmul.f32 -64.871254, %v2720_v10  ;;  %v2706_v35 = vsub.f32 %v3404_v51, %v4543_v7  ;;  %v2634_v56 = vpop.f32.mrb[7].mxu1 }
 0x1f5   : > { %3656 = vpow2.f32 %v2751_v40  ;;  %v2735_v47 = vmul.f32 -64.871254, %v2719_v21  ;;  %v2705_v9 = vsub.f32 %v2634_v56, %v4543_v7  ;;  %v4568_v32 = vpop.f32.mrb[8].mxu0 }
 0x1f6   : > { %v2757_v37 = vmul.f32 1.442695, %v2736_v3  ;;  %v2722_v28 = vmul.f32 %v2706_v35, %v2706_v35  ;;  %v4570_v62 = vpop.f32.mrb[9].mxu0 }
 0x1f7   : > { %v2755_v41 = vmul.f32 1.442695, %v2735_v47  ;;  %v2721_v2 = vmul.f32 %v2705_v9, %v2705_v9  ;;  %v3407_v46 = vpop.f32.mrb[8].mxu1 }
 0x1f8   : > { %3658 = vpow2.f32 %v2757_v37  ;;  %v2738_v4 = vmul.f32 -64.871254, %v2722_v28  ;;  %v2708_v19 = vsub.f32 %v3407_v46, %v4543_v7  ;;  %v2646_v53 = vpop.f32.mrb[9].mxu1 }
 0x1f9   : > { %3660 = vpow2.f32 %v2755_v41  ;;  %v2737_v12 = vmul.f32 -64.871254, %v2721_v2  ;;  %v2707_v55 = vsub.f32 %v2646_v53, %v4543_v7  ;;  %v4576_v61 = vpop.f32.mrb[10].mxu0 }
 0x1fa   : > { %v3651_v13 = vpop.eup %3650  ;;  %v2761_v44 = vmul.f32 1.442695, %v2738_v4  ;;  %v2724_v26 = vmul.f32 %v2708_v19, %v2708_v19  ;;  %v4578_v1 = vpop.f32.mrb[11].mxu0 }
 0x1fb   : > { %v3653_v63 = vpop.eup %3652  ;;  %v2780_v58 = vmul.f32 %v3651_v13, %v4538_v6  ;;  %v2759_v0 = vmul.f32 1.442695, %v2737_v12  ;;  %v2723_v45 = vmul.f32 %v2707_v55, %v2707_v55  ;;  %v3410_v17 = vpop.f32.mrb[10].mxu1 }
 0x1fc   : > { %v2779_v54 = vmul.f32 %v3653_v63, %v4545_v11  ;;  %3662 = vpow2.f32 %v2761_v44  ;;  %v2740_v14 = vmul.f32 -64.871254, %v2724_v26  ;;  %v2710_v27 = vsub.f32 %v3410_v17, %v4543_v7  ;;  %v2658_v30 = vpop.f32.mrb[11].mxu1 }
 0x1fd   : > { %2796 = vst [vmem:[%s4583_s8 + $0x8] sm:$0xff] %v2780_v58  ;;  %3664 = vpow2.f32 %v2759_v0  ;;  %v2739_v50 = vmul.f32 -64.871254, %v2723_v45  ;;  %v2709_v8 = vsub.f32 %v2658_v30, %v4543_v7  ;;  %v4587_v6 = vpop.f32.mrb[12].mxu0 }
 0x1fe   : > { %v3655_v38 = vpop.eup %3654  ;;  %2795 = vst [vmem:[%s4583_s8] sm:$0xff] %v2779_v54  ;;  %v2765_v11 = vmul.f32 1.442695, %v2740_v14  ;;  %v2726_v59 = vmul.f32 %v2710_v27, %v2710_v27  ;;  %v4590_v36 = vpop.f32.mrb[13].mxu0 }
 0x1ff   : > { %v3657_v33 = vpop.eup %3656  ;;  %v2782_v49 = vmul.f32 %v3655_v38, %v4549_v57  ;;  %v2763_v42 = vmul.f32 1.442695, %v2739_v50  ;;  %v2725_v43 = vmul.f32 %v2709_v8, %v2709_v8  ;;  %v3413_v23 = vpop.f32.mrb[12].mxu1 }
 0x200   : > { %v2781_v31 = vmul.f32 %v3657_v33, %v4551_v16  ;;  %3666 = vpow2.f32 %v2765_v11  ;;  %v2742_v15 = vmul.f32 -64.871254, %v2726_v59  ;;  %v2712_v52 = vsub.f32 %v3413_v23, %v4543_v7  ;;  %v2670_v48 = vpop.f32.mrb[13].mxu1 }
 0x201   : > { %2798 = vst [vmem:[%s4583_s8 + $0x18] sm:$0xff] %v2782_v49  ;;  %3668 = vpow2.f32 %v2763_v42  ;;  %v2741_v60 = vmul.f32 -64.871254, %v2725_v43  ;;  %v2711_v29 = vsub.f32 %v2670_v48, %v4543_v7  ;;  %v3260_v22 = vpop.f32.mrb[14].mxu0 }
 0x202   : > { %v3659_v25 = vpop.eup %3658  ;;  %2797 = vst [vmem:[%s4583_s8 + $0x10] sm:$0xff] %v2781_v31  ;;  %v2769_v57 = vmul.f32 1.442695, %v2742_v15  ;;  %v2728_v5 = vmul.f32 %v2712_v52, %v2712_v52  ;;  %v1543_v18 = vpop.f32.mrb[15].mxu0 }
 0x203   : > { %v3661_v10 = vpop.eup %3660  ;;  %v2784_v16 = vmul.f32 %v3659_v25, %v4555_v34  ;;  %v2767_v40 = vmul.f32 1.442695, %v2741_v60  ;;  %v2727_v21 = vmul.f32 %v2711_v29, %v2711_v29  ;;  %v3416_v51 = vpop.f32.mrb[14].mxu1 }
 0x204   : > { %v2783_v3 = vmul.f32 %v3661_v10, %v4557_v39  ;;  %3670 = vpow2.f32 %v2769_v57  ;;  %v2744_v35 = vmul.f32 -64.871254, %v2728_v5  ;;  %v2714_v56 = vsub.f32 %v3416_v51, %v4543_v7  ;;  %v2682_v47 = vpop.f32.mrb[15].mxu1 }
 0x205   : > { %2800 = vst [vmem:[%s4583_s8 + $0x28] sm:$0xff] %v2784_v16  ;;  %3672 = vpow2.f32 %v2767_v40  ;;  %v2743_v9 = vmul.f32 -64.871254, %v2727_v21  ;;  %v2713_v37 = vsub.f32 %v2682_v47, %v4543_v7 }
 0x206   : > { %v3663_v28 = vpop.eup %3662  ;;  %2799 = vst [vmem:[%s4583_s8 + $0x20] sm:$0xff] %v2783_v3  ;;  %v2773_v34 = vmul.f32 1.442695, %v2744_v35  ;;  %v2730_v41 = vmul.f32 %v2714_v56, %v2714_v56 }
 0x207   : > { %v3665_v2 = vpop.eup %3664  ;;  %v2786_v46 = vmul.f32 %v3663_v28, %v4561_v24  ;;  %v2771_v39 = vmul.f32 1.442695, %v2743_v9  ;;  %v2729_v4 = vmul.f32 %v2713_v37, %v2713_v37 }
 0x208   : > { %v2785_v19 = vmul.f32 %v3665_v2, %v4563_v20  ;;  %3674 = vpow2.f32 %v2773_v34  ;;  %v2746_v53 = vmul.f32 -64.871254, %v2730_v41 }
 0x209   : > { %2802 = vst [vmem:[%s4583_s8 + $0x38] sm:$0xff] %v2786_v46  ;;  %3676 = vpow2.f32 %v2771_v39  ;;  %v2745_v12 = vmul.f32 -64.871254, %v2729_v4 }
 0x20a   : > { %v3667_v7 = vpop.eup %3666  ;;  %2801 = vst [vmem:[%s4583_s8 + $0x30] sm:$0xff] %v2785_v19  ;;  %v2777_v55 = vmul.f32 1.442695, %v2746_v53 }
 0x20b   : > { %v3669_v13 = vpop.eup %3668  ;;  %v2788_v44 = vmul.f32 %v3667_v7, %v4568_v32  ;;  %v2775_v24 = vmul.f32 1.442695, %v2745_v12 }
 0x20c   : > { %v2787_v26 = vmul.f32 %v3669_v13, %v4570_v62  ;;  %3678 = vpow2.f32 %v2777_v55 }
 0x20d   : > { %2804 = vst [vmem:[%s4583_s8 + $0x48] sm:$0xff] %v2788_v44  ;;  %3680 = vpow2.f32 %v2775_v24 }
 0x20e   : > { %v3671_v20 = vpop.eup %3670  ;;  %2803 = vst [vmem:[%s4583_s8 + $0x40] sm:$0xff] %v2787_v26 }
 0x20f   : > { %v3673_v63 = vpop.eup %3672  ;;  %v2790_v58 = vmul.f32 %v3671_v20, %v4576_v61 }
 0x210   : > { %v2789_v0 = vmul.f32 %v3673_v63, %v4578_v1 }
 0x211   : > { %2806 = vst [vmem:[%s4583_s8 + $0x58] sm:$0xff] %v2790_v58 }
 0x212   : > { %v3675_v32 = vpop.eup %3674  ;;  %2805 = vst [vmem:[%s4583_s8 + $0x50] sm:$0xff] %v2789_v0 }
 0x213   : > { %v3677_v62 = vpop.eup %3676  ;;  %v2792_v45 = vmul.f32 %v3675_v32, %v4587_v6 }
 0x214   : > { %v2791_v17 = vmul.f32 %v3677_v62, %v4590_v36 }
 0x215   : > { %2808 = vst [vmem:[%s4583_s8 + $0x68] sm:$0xff] %v2792_v45 }
 0x216   : > { %v3679_v54 = vpop.eup %3678  ;;  %2807 = vst [vmem:[%s4583_s8 + $0x60] sm:$0xff] %v2791_v17 }
 0x217   : > { %v3681_v61 = vpop.eup %3680  ;;  %v2794_v14 = vmul.f32 %v3679_v54, %v3260_v22 }
 0x218   : > { %v2793_v1 = vmul.f32 %v3681_v61, %v1543_v18 }
 0x219   : > { %2810 = vst [vmem:[%s4583_s8 + $0x78] sm:$0xff] %v2794_v14 }
 0x21a   : > { %2809 = vst [vmem:[%s4583_s8 + $0x70] sm:$0xff] %v2793_v1 }
 0x21b   : > { %3695 = shalt.err (!%p3692_p3)
}
 0x21c   : > { %s3696_s27 = scalar_lea.hbm %s4625_s19, 2048  ;;  %s3700_s30 = scalar_lea.hbm %s4677_s3, 4096 }
 0x21d   : > { %p3697_p4 = scmp.ne.s32.totalorder %s4625_s19, %s3696_s27  ;;  %p3701_p9 = scmp.lt.u32.totalorder %s4625_s19, %s4677_s3 }
 0x21e   : > { %p3702_p10 = scmp.lt.u32.totalorder %s3700_s30, %s3696_s27  ;;  %p3704_p12 = scmp.lt.u32.totalorder %s3696_s27, %s4625_s19 }
 0x21f   : > { %p3698_p7 = pnand %p3697_p4, %p3807_p5 }
 0x220   : > { %p3703_p11 = por %p3702_p10, %p3701_p9 }
 0x221   : > { %p3699_p8 = pneg %p3698_p7 }
 0x222   : > { %p3705_p13 = por %p3704_p12, %p3703_p11 }
 0x224   : > { %p3706_p0 = pnand %p3705_p13, %p3699_p8 }
 0x226   : > { %3709 = shalt.err (!%p3706_p0)
}
 0x227   : > { %s3747_s6 = smov 128   ;;  %s3748_s7 = smov 8  }
 0x228   : > { %3577 = dma.vmem_to_hbm [thread:$0]  (%p3807_p5), %s4627_s10, 2048, %s4625_s19, %s4633_s16, %s3747_s6, %s3747_s6, %s3748_s7  }
 0x229 PF: > { %p3583_p1 = scmp.ge.s32.totalorder %s3744_s15, 2  ;;  %s2840_s8 = sand.u32 1, %s3732_s12  }
 0x22a   : > { %s2841_s9 = scalar_lea.sflag [#allocation3], %s2840_s8 }
 0x22b   : > { %p3580_p2 = pnand %p3583_p1, %p3811_p6 }
 0x22d   : > { %3727 = dma.done.wait (!%p3580_p2), %s2841_s9, 2048  }
 0x22e   : > { %3729 = vsyncadd (!%p3580_p2), %s2841_s9, 4294965248  ;;  %p13_p3 = scmp.ge.s32.totalorder %s3794_s18, 4   ;;  %s4832_s12 = smov %s3736_s13 }
 0x22f   : > { %s4833_s13 = smov %s3740_s14  ;;  %s4834_s14 = smov %s3805_s21 }
 0x230   : > { %s4835_s15 = smov %s3794_s18  ;;  %15 = sbr.rel (!%p13_p3) target bundleno = 3 (0x3), region = 67 }
 0x237   :  { %2846 = vsyncpa [#allocation3], 1 }
 0x238   :  { %2848 = vsyncpa [#allocation3 + $0x1], 1 }

</bundles_post_ra>
